<compile_context>
chip_gen: v7x
topology: tpu7x:2x2x1
jax: 0.10.0
libtpu: 0.0.40
codegen_flags: <defaults>
</compile_context>

<pallas_src>
import functools
import math

import jax
import jax.numpy as jnp
from jax.experimental import pallas as pl
from jax.experimental.pallas import tpu as pltpu


# Scoped VMEM budget: <= v7x's 64 MiB physical VMEM per TensorCore, well under
# the 128 MiB of v5e/v6e, and above the 16/32 MiB defaults.
_VMEM_LIMIT_BYTES = 64 * 1024 * 1024


# ----------------------------- kernels --------------------------------------


def _mha_ln_kernel(*refs, num_heads, d_k, causal, has_mask):
    """Flash-tiled MHA + residual add + LayerNorm for one (batch, q-block) tile.

    Grid = (B, Sq/TQ, Skv/TK); the KV axis is the innermost ("arbitrary")
    reduction axis with online-softmax state kept in VMEM scratch.
    """
    idx = 0
    xq_ref = refs[idx]; idx += 1
    xkv_ref = refs[idx]; idx += 1
    mask_ref = None
    if has_mask:
        mask_ref = refs[idx]; idx += 1
    (wq_ref, bq_ref, wkv_ref, bkv_ref, wo_ref, bo_ref, gamma_ref, beta_ref,
     out_ref, q_sc, m_sc, l_sc, acc_sc) = refs[idx:]

    D = num_heads * d_k
    kv_i = pl.program_id(2)

    # ---- init (once per (batch, q-block)): Q projection + online-softmax state.
    @pl.when(kv_i == 0)
    def _():
        xq = xq_ref[0]                                               # (TQ, D) f32
        q = jnp.dot(xq.astype(jnp.bfloat16), wq_ref[...],
                    preferred_element_type=jnp.float32) + bq_ref[...]
        q = q * (1.0 / math.sqrt(d_k))          # fold 1/sqrt(d_k): TQ*D muls only
        tq = q.shape[0]
        # head-batched layout, cached in bf16 for the score matmuls
        q_sc[...] = q.reshape(tq, num_heads, d_k).transpose(1, 0, 2).astype(jnp.bfloat16)
        m_sc[...] = jnp.full_like(m_sc, -jnp.inf)
        l_sc[...] = jnp.zeros_like(l_sc)
        acc_sc[...] = jnp.zeros_like(acc_sc)

    # ---- per KV block: fused K/V projection, scores, online softmax update.
    xkv = xkv_ref[0]                                                 # (TK, D) f32
    kvp = jnp.dot(xkv.astype(jnp.bfloat16), wkv_ref[...],
                  preferred_element_type=jnp.float32) + bkv_ref[...]  # (TK, 2D) f32
    tk = kvp.shape[0]
    k = kvp[:, :D].reshape(tk, num_heads, d_k).transpose(1, 0, 2).astype(jnp.bfloat16)
    v = kvp[:, D:].reshape(tk, num_heads, d_k).transpose(1, 0, 2).astype(jnp.bfloat16)

    q = q_sc[...]                                                    # (H, TQ, d_k) bf16
    s = jnp.einsum("hqd,hkd->hqk", q, k,
                   preferred_element_type=jnp.float32)               # (H, TQ, TK) f32
    tq = s.shape[1]

    if causal:
        # Causal mask generated in-kernel: no O(S^2) HBM mask traffic.
        row = jax.lax.broadcasted_iota(jnp.int32, (tq, tk), 0) + pl.program_id(1) * tq
        col = jax.lax.broadcasted_iota(jnp.int32, (tq, tk), 1) + kv_i * tk
        s = jnp.where((col > row)[None, :, :], -1000000000.0, s)
    elif has_mask:
        s = jnp.where((mask_ref[0] == 0)[None, :, :], -1000000000.0, s)

    m_prev = m_sc[...]
    m_new = jnp.maximum(m_prev, jnp.max(s, axis=-1, keepdims=True))
    alpha = jnp.exp(m_prev - m_new)
    p = jnp.exp(s - m_new)
    l_sc[...] = alpha * l_sc[...] + jnp.sum(p, axis=-1, keepdims=True)
    acc_sc[...] = alpha * acc_sc[...] + jnp.einsum(
        "hqk,hkd->hqd", p.astype(jnp.bfloat16), v,
        preferred_element_type=jnp.float32)
    m_sc[...] = m_new

    # ---- finalize: normalize (EUP reciprocal), W_o, fused residual + LayerNorm.
    @pl.when(kv_i == pl.num_programs(2) - 1)
    def _():
        o = acc_sc[...] * pl.reciprocal(l_sc[...], approx=True)      # (H, TQ, d_k) f32
        tq_f = o.shape[1]
        o = o.transpose(1, 0, 2).reshape(tq_f, D)                    # concat heads -> (TQ, D)
        attn = jnp.dot(o.astype(jnp.bfloat16), wo_ref[...],
                       preferred_element_type=jnp.float32) + bo_ref[...]
        res = xq_ref[0] + attn                                       # f32 residual
        mean = jnp.mean(res, axis=-1, keepdims=True)
        cent = res - mean
        var = jnp.mean(cent * cent, axis=-1, keepdims=True)
        out_ref[0] = (cent * jax.lax.rsqrt(var + 1e-5) * gamma_ref[...]
                      + beta_ref[...]).astype(out_ref.dtype)


def _ffn_ln_kernel(x_ref, w1_ref, b1_ref, w2_ref, b2_ref, gamma_ref, beta_ref,
                   out_ref, acc_ref, *, approx_gelu):
    """FFN K-tiled over d_ff (innermost axis), fused residual + LayerNorm epilogue."""
    kk = pl.program_id(2)

    @pl.when(kk == 0)
    def _():
        acc_ref[...] = jnp.zeros_like(acc_ref)

    x = x_ref[0]                                                     # (TQ, D) f32
    h = jnp.dot(x.astype(jnp.bfloat16), w1_ref[...],
                preferred_element_type=jnp.float32) + b1_ref[...]    # (TQ, TK) f32
    if approx_gelu:
        # tanh-approx GELU runs on the EUP (deliberate numerics change vs nn.GELU()).
        h = jax.nn.gelu(h, approximate=True)
    else:
        h = 0.5 * h * (1.0 + jax.lax.erf(h * (1.0 / math.sqrt(2.0))))  # exact nn.GELU
    acc_ref[...] += jnp.dot(h.astype(jnp.bfloat16), w2_ref[...],
                            preferred_element_type=jnp.float32)

    @pl.when(kk == pl.num_programs(2) - 1)
    def _():
        res = x + acc_ref[...] + b2_ref[...]
        mean = jnp.mean(res, axis=-1, keepdims=True)
        cent = res - mean
        var = jnp.mean(cent * cent, axis=-1, keepdims=True)
        out_ref[0] = (cent * jax.lax.rsqrt(var + 1e-5) * gamma_ref[...]
                      + beta_ref[...]).astype(out_ref.dtype)


# ----------------------------- wrappers --------------------------------------


def _const_spec(shape):
    """Weight replicated across the 3-D grid: constant block index, single-buffered."""
    zeros = (0,) * len(shape)
    return pl.BlockSpec(shape, lambda b, q, k: zeros, pipeline_mode=pl.Buffered(1))


def _pick_block(n, preferred):
    for t in preferred:
        if n >= t and n % t == 0:
            return t
    return n   # full extent (always a legal block shape)


def _row_tile_prefs():
    # 256-row tiles fill the 256-wide MXU on v6e/v7x; v5e's MXU is 128-wide.
    kind = jax.devices()[0].device_kind.lower()
    if "v5 lite" in kind or "v5e" in kind:
        return (128,)
    return (256, 128)


def mha_add_ln(xq, xkv, mask, wq_t, bq, wkv_t, bkv, wo_t, bo, gamma, beta, *, num_heads):
    """LayerNorm(xq + MHA(xq, xkv, xkv, mask)) with flash tiling.

    `mask` may be None (no masking), the string "causal" (mask generated
    in-kernel), or a [B, Sq, Skv] array (1 = keep, 0 = masked; shipped as int8).
    """
    B, Sq, D = xq.shape
    Skv = xkv.shape[1]
    d_k = D // num_heads

    causal = isinstance(mask, str) and mask == "causal"
    mask_arr = None
    if (mask is not None) and not causal:
        mask_arr = (mask != 0).astype(jnp.int8)
    has_mask = mask_arr is not None

    tq = _pick_block(Sq, _row_tile_prefs())
    tk = _pick_block(Skv, (512, 256, 128))
    nq, nkv = Sq // tq, Skv // tk

    args = [xq, xkv]
    in_specs = [
        pl.BlockSpec((1, tq, D), lambda b, q, k: (b, q, 0)),
        pl.BlockSpec((1, tk, D), lambda b, q, k: (b, k, 0)),
    ]
    if has_mask:
        args.append(mask_arr)
        in_specs.append(pl.BlockSpec((1, tq, tk), lambda b, q, k: (b, q, k)))
    for w in (wq_t, bq, wkv_t, bkv, wo_t, bo, gamma, beta):
        args.append(w)
        in_specs.append(_const_spec(w.shape))

    kernel = functools.partial(_mha_ln_kernel, num_heads=num_heads, d_k=d_k,
                               causal=causal, has_mask=has_mask)

    grid_spec = pltpu.PrefetchScalarGridSpec(
        num_scalar_prefetch=0,
        grid=(B, nq, nkv),
        in_specs=in_specs,
        out_specs=pl.BlockSpec((1, tq, D), lambda b, q, k: (b, q, 0)),
        scratch_shapes=[
            pltpu.VMEM((num_heads, tq, d_k), jnp.bfloat16),   # cached, scaled Q
            pltpu.VMEM((num_heads, tq, 1), jnp.float32),      # m (running max)
            pltpu.VMEM((num_heads, tq, 1), jnp.float32),      # l (running sum)
            pltpu.VMEM((num_heads, tq, d_k), jnp.float32),    # acc
        ],
    )

    return pl.pallas_call(
        kernel,
        out_shape=jax.ShapeDtypeStruct((B, Sq, D), xq.dtype),
        grid_spec=grid_spec,
        compiler_params=pltpu.CompilerParams(
            dimension_semantics=("parallel", "parallel", "arbitrary"),
            vmem_limit_bytes=_VMEM_LIMIT_BYTES),
    )(*args)


def ffn_add_ln(x, w1_t, b1, w2_t, b2, gamma, beta, *, approx_gelu=False):
    """LayerNorm(x + FFN(x)); grid over (batch, q-block, d_ff-block)."""
    B, S, D = x.shape
    D_FF = w1_t.shape[1]
    tq = _pick_block(S, _row_tile_prefs())
    tk = _pick_block(D_FF, (512, 256, 128))
    nq, nk = S // tq, D_FF // tk

    kernel = functools.partial(_ffn_ln_kernel, approx_gelu=approx_gelu)
    grid_spec = pltpu.PrefetchScalarGridSpec(
        num_scalar_prefetch=0,
        grid=(B, nq, nk),
        in_specs=[
            pl.BlockSpec((1, tq, D), lambda b, q, k: (b, q, 0)),
            pl.BlockSpec((D, tk), lambda b, q, k: (0, k)),    # W1 slice (varies with k)
            pl.BlockSpec((1, tk), lambda b, q, k: (0, k)),    # b1 slice
            pl.BlockSpec((tk, D), lambda b, q, k: (k, 0)),    # W2 slice
            _const_spec(b2.shape),
            _const_spec(gamma.shape),
            _const_spec(beta.shape),
        ],
        out_specs=pl.BlockSpec((1, tq, D), lambda b, q, k: (b, q, 0)),
        scratch_shapes=[pltpu.VMEM((tq, D), jnp.float32)],
    )

    return pl.pallas_call(
        kernel,
        out_shape=jax.ShapeDtypeStruct((B, S, D), x.dtype),
        grid_spec=grid_spec,
        compiler_params=pltpu.CompilerParams(
            dimension_semantics=("parallel", "parallel", "arbitrary"),
            vmem_limit_bytes=_VMEM_LIMIT_BYTES),
    )(x, w1_t, b1, w2_t, b2, gamma, beta)


def decoder_layer(params, x, enc_output, src_mask, tgt_mask, *, num_heads):
    # Dropout layers are identity in eval mode.
    x = mha_add_ln(x, x, tgt_mask, *params["self_attn"], *params["norm1"],
                   num_heads=num_heads)
    x = mha_add_ln(x, enc_output, src_mask, *params["cross_attn"], *params["norm2"],
                   num_heads=num_heads)
    x = ffn_add_ln(x, *params["ffn"], *params["norm3"])
    return x


# ----------------------------- params & reference ----------------------------


def _init_linear(key, fan_in, fan_out):
    kw, kb = jax.random.split(key)
    bound = 1.0 / math.sqrt(fan_in)
    w = jax.random.uniform(kw, (fan_out, fan_in), jnp.float32, -bound, bound)
    b = jax.random.uniform(kb, (fan_out,), jnp.float32, -bound, bound)
    return w.T, b.reshape(1, fan_out)   # pre-transposed weight [in, out], bias [1, out]


def _init_attn(keys, d_model):
    wq, bq = _init_linear(keys[0], d_model, d_model)
    wk, bk = _init_linear(keys[1], d_model, d_model)
    wv, bv = _init_linear(keys[2], d_model, d_model)
    wo, bo = _init_linear(keys[3], d_model, d_model)
    wkv = jnp.concatenate([wk, wv], axis=1)          # fused K/V weight (D, 2D)
    bkv = jnp.concatenate([bk, bv], axis=1)          # (1, 2D)
    return (wq.astype(jnp.bfloat16), bq,
            wkv.astype(jnp.bfloat16), bkv,
            wo.astype(jnp.bfloat16), bo)


def init_params(key, d_model, d_ff):
    keys = jax.random.split(key, 10)
    self_attn = _init_attn(keys[0:4], d_model)
    cross_attn = _init_attn(keys[4:8], d_model)
    w1, b1 = _init_linear(keys[8], d_model, d_ff)
    w2, b2 = _init_linear(keys[9], d_ff, d_model)
    ffn = (w1.astype(jnp.bfloat16), b1, w2.astype(jnp.bfloat16), b2)
    ln = (jnp.ones((1, d_model), jnp.float32), jnp.zeros((1, d_model), jnp.float32))
    return {"self_attn": self_attn, "cross_attn": cross_attn, "ffn": ffn,
            "norm1": ln, "norm2": ln, "norm3": ln}


def _ref_mha(xq, xkv, mask, wq_t, bq, wkv_t, bkv, wo_t, bo, *, num_heads):
    B, Sq, D = xq.shape
    Skv = xkv.shape[1]
    d_k = D // num_heads
    wq = wq_t.astype(jnp.float32)
    wkv = wkv_t.astype(jnp.float32)
    wo = wo_t.astype(jnp.float32)
    q = xq @ wq + bq
    k = xkv @ wkv[:, :D] + bkv[:, :D]
    v = xkv @ wkv[:, D:] + bkv[:, D:]

    def split(t, S):
        return t.reshape(B, S, num_heads, d_k).transpose(0, 2, 1, 3)

    q, k, v = split(q, Sq), split(k, Skv), split(v, Skv)
    s = jnp.einsum("bhqd,bhkd->bhqk", q, k) / math.sqrt(d_k)
    if mask is not None:
        s = jnp.where(mask[:, None, :, :] == 0.0, -1000000000.0, s)
    p = jax.nn.softmax(s, axis=-1)
    o = jnp.einsum("bhqk,bhkd->bhqd", p, v).transpose(0, 2, 1, 3).reshape(B, Sq, D)
    return o @ wo + bo


def _ref_add_ln(x, y, gamma, beta):
    v = x + y
    mean = jnp.mean(v, axis=-1, keepdims=True)
    var = jnp.mean((v - mean) ** 2, axis=-1, keepdims=True)
    return (v - mean) * jax.lax.rsqrt(var + 1e-5) * gamma + beta


def _ref_decoder(params, x, enc, src_mask, tgt_mask, *, num_heads):
    a = _ref_mha(x, x, tgt_mask, *params["self_attn"], num_heads=num_heads)
    x = _ref_add_ln(x, a, *params["norm1"])
    a = _ref_mha(x, enc, src_mask, *params["cross_attn"], num_heads=num_heads)
    x = _ref_add_ln(x, a, *params["norm2"])
    w1_t, b1, w2_t, b2 = params["ffn"]
    h = jax.nn.gelu(x @ w1_t.astype(jnp.float32) + b1, approximate=False)
    x = _ref_add_ln(x, h @ w2_t.astype(jnp.float32) + b2, *params["norm3"])
    return x


# ----------------------------- main ------------------------------------------

if __name__ == "__main__":
    B, S, S_ENC, D, H, D_FF = 2, 8, 16, 32, 4, 64

    key = jax.random.PRNGKey(0)
    kx, kenc, kp = jax.random.split(key, 3)

    x = jax.random.normal(kx, (B, S, D), jnp.float32)
    enc_output = jax.random.normal(kenc, (B, S_ENC, D), jnp.float32)   # encoder len != decoder len
    params = init_params(kp, D, D_FF)

    # Kernel: causal tgt mask generated in-kernel (no mask DMA); all-ones src mask -> None.
    out = decoder_layer(params, x, enc_output, src_mask=None, tgt_mask="causal",
                        num_heads=H)
    out = jax.block_until_ready(out)

    # f32-activation reference with explicit masks (matches the PyTorch module).
    tgt_mask = jnp.broadcast_to(jnp.tril(jnp.ones((S, S), jnp.float32)), (B, S, S))
    src_mask = jnp.ones((B, S, S_ENC), jnp.float32)
    ref = _ref_decoder(params, x, enc_output, src_mask, tgt_mask, num_heads=H)

    assert out.shape == (B, S, D)
    # bf16 MXU operands + approx reciprocal vs f32 reference -> 5% tolerance.
    assert jnp.allclose(out, ref, rtol=5e-2, atol=5e-2), \
        f"max abs err {float(jnp.max(jnp.abs(out - ref)))}"

    print("KERNEL_OK")
</pallas_src>

<mosaic_0001>
module attributes {stable_mosaic.version = 11 : i64} {
  func.func @_mha_ln_kernel(%arg0: i32, %arg1: i32, %arg2: i32, %arg3: memref<1x8x32xf32, #tpu.memory_space<vmem>>, %arg4: memref<1x8x32xf32, #tpu.memory_space<vmem>>, %arg5: memref<32x32xbf16, #tpu.memory_space<vmem>>, %arg6: memref<1x32xf32, #tpu.memory_space<vmem>>, %arg7: memref<32x64xbf16, #tpu.memory_space<vmem>>, %arg8: memref<1x64xf32, #tpu.memory_space<vmem>>, %arg9: memref<32x32xbf16, #tpu.memory_space<vmem>>, %arg10: memref<1x32xf32, #tpu.memory_space<vmem>>, %arg11: memref<1x32xf32, #tpu.memory_space<vmem>>, %arg12: memref<1x32xf32, #tpu.memory_space<vmem>>, %arg13: memref<1x8x32xf32, #tpu.memory_space<vmem>>, %arg14: memref<4x8x8xbf16, #tpu.memory_space<vmem>>, %arg15: memref<4x8x1xf32, #tpu.memory_space<vmem>>, %arg16: memref<4x8x1xf32, #tpu.memory_space<vmem>>, %arg17: memref<4x8x8xf32, #tpu.memory_space<vmem>>) attributes {dimension_semantics = [#tpu.dimension_semantics<parallel>, #tpu.dimension_semantics<parallel>, #tpu.dimension_semantics<arbitrary>], iteration_bounds = array<i64: 2, 1, 1>, scalar_prefetch = 0 : i64, scratch_operands = 4 : i64, tpu.core_type = #tpu.core_type<tc>, window_params = [{transform_indices = @transform_0, window_bounds = array<i64: 1, 8, 32>}, {transform_indices = @transform_1, window_bounds = array<i64: 1, 8, 32>}, {pipeline_mode = #tpu.pipeline_mode<synchronous>, transform_indices = @transform_2, window_bounds = array<i64: 32, 32>}, {pipeline_mode = #tpu.pipeline_mode<synchronous>, transform_indices = @transform_3, window_bounds = array<i64: 1, 32>}, {pipeline_mode = #tpu.pipeline_mode<synchronous>, transform_indices = @transform_4, window_bounds = array<i64: 32, 64>}, {pipeline_mode = #tpu.pipeline_mode<synchronous>, transform_indices = @transform_5, window_bounds = array<i64: 1, 64>}, {pipeline_mode = #tpu.pipeline_mode<synchronous>, transform_indices = @transform_6, window_bounds = array<i64: 32, 32>}, {pipeline_mode = #tpu.pipeline_mode<synchronous>, transform_indices = @transform_7, window_bounds = array<i64: 1, 32>}, {pipeline_mode = #tpu.pipeline_mode<synchronous>, transform_indices = @transform_8, window_bounds = array<i64: 1, 32>}, {pipeline_mode = #tpu.pipeline_mode<synchronous>, transform_indices = @transform_9, window_bounds = array<i64: 1, 32>}, {transform_indices = @transform_10, window_bounds = array<i64: 1, 8, 32>}]} {
    %c0_i32 = arith.constant 0 : i32
    %0 = arith.cmpi eq, %arg2, %c0_i32 : i32
    %1 = arith.extui %0 : i1 to i32
    %c0_i32_0 = arith.constant 0 : i32
    %2 = arith.cmpi ne, %1, %c0_i32_0 : i32
    scf.if %2 {
      %c0_36 = arith.constant 0 : index
      %c0_37 = arith.constant 0 : index
      %c0_38 = arith.constant 0 : index
      %61 = vector.load %arg3[%c0_36, %c0_37, %c0_38] : memref<1x8x32xf32, #tpu.memory_space<vmem>>, vector<1x8x32xf32>
      %62 = vector.shape_cast %61 : vector<1x8x32xf32> to vector<8x32xf32>
      %63 = arith.truncf %62 : vector<8x32xf32> to vector<8x32xbf16>
      %c0_39 = arith.constant 0 : index
      %c0_40 = arith.constant 0 : index
      %64 = vector.load %arg5[%c0_39, %c0_40] : memref<32x32xbf16, #tpu.memory_space<vmem>>, vector<32x32xbf16>
      %cst_41 = arith.constant dense<0.000000e+00> : vector<8x32xf32>
      %65 = tpu.matmul %63, %64, %cst_41 {dimension_numbers = #tpu.dot_dimension_numbers<[1], [0], [0], [1], [0, 0, 1, 1], [], []>} : vector<8x32xbf16>, vector<32x32xbf16>, vector<8x32xf32> -> vector<8x32xf32>
      %c0_42 = arith.constant 0 : index
      %c0_43 = arith.constant 0 : index
      %66 = vector.load %arg6[%c0_42, %c0_43] : memref<1x32xf32, #tpu.memory_space<vmem>>, vector<1x32xf32>
      %67 = vector.broadcast %66 : vector<1x32xf32> to vector<8x32xf32>
      %68 = arith.addf %65, %67 : vector<8x32xf32>
      %cst_44 = arith.constant 0.353553385 : f32
      %69 = vector.broadcast %cst_44 : f32 to vector<8x32xf32>
      %70 = arith.mulf %68, %69 : vector<8x32xf32>
      %71 = vector.shape_cast %70 : vector<8x32xf32> to vector<8x4x8xf32>
      %72 = tpu.transpose %71, [1, 0, 2] : vector<8x4x8xf32> -> vector<4x8x8xf32>
      %73 = arith.truncf %72 : vector<4x8x8xf32> to vector<4x8x8xbf16>
      %c0_45 = arith.constant 0 : index
      %c0_46 = arith.constant 0 : index
      %c0_47 = arith.constant 0 : index
      %74 = vector.load %arg14[%c0_45, %c0_46, %c0_47] : memref<4x8x8xbf16, #tpu.memory_space<vmem>>, vector<4x8x8xbf16>
      tpu.vector_store %arg14[%c0_45, %c0_46, %c0_47], %73 {strides = array<i32>} : memref<4x8x8xbf16, #tpu.memory_space<vmem>>, vector<4x8x8xbf16>,
      %cst_48 = arith.constant 0xFF800000 : f32
      %75 = vector.broadcast %cst_48 : f32 to vector<4x8x1xf32>
      %c0_49 = arith.constant 0 : index
      %c0_50 = arith.constant 0 : index
      %c0_51 = arith.constant 0 : index
      %76 = vector.load %arg15[%c0_49, %c0_50, %c0_51] : memref<4x8x1xf32, #tpu.memory_space<vmem>>, vector<4x8x1xf32>
      tpu.vector_store %arg15[%c0_49, %c0_50, %c0_51], %75 {strides = array<i32>} : memref<4x8x1xf32, #tpu.memory_space<vmem>>, vector<4x8x1xf32>,
      %cst_52 = arith.constant 0.000000e+00 : f32
      %77 = vector.broadcast %cst_52 : f32 to vector<4x8x1xf32>
      %c0_53 = arith.constant 0 : index
      %c0_54 = arith.constant 0 : index
      %c0_55 = arith.constant 0 : index
      %78 = vector.load %arg16[%c0_53, %c0_54, %c0_55] : memref<4x8x1xf32, #tpu.memory_space<vmem>>, vector<4x8x1xf32>
      tpu.vector_store %arg16[%c0_53, %c0_54, %c0_55], %77 {strides = array<i32>} : memref<4x8x1xf32, #tpu.memory_space<vmem>>, vector<4x8x1xf32>,
      %cst_56 = arith.constant 0.000000e+00 : f32
      %79 = vector.broadcast %cst_56 : f32 to vector<4x8x8xf32>
      %c0_57 = arith.constant 0 : index
      %c0_58 = arith.constant 0 : index
      %c0_59 = arith.constant 0 : index
      %80 = vector.load %arg17[%c0_57, %c0_58, %c0_59] : memref<4x8x8xf32, #tpu.memory_space<vmem>>, vector<4x8x8xf32>
      tpu.vector_store %arg17[%c0_57, %c0_58, %c0_59], %79 {strides = array<i32>} : memref<4x8x8xf32, #tpu.memory_space<vmem>>, vector<4x8x8xf32>,
    } else {
    }
    %c0 = arith.constant 0 : index
    %c0_1 = arith.constant 0 : index
    %c0_2 = arith.constant 0 : index
    %3 = vector.load %arg4[%c0, %c0_1, %c0_2] : memref<1x8x32xf32, #tpu.memory_space<vmem>>, vector<1x8x32xf32>
    %4 = vector.shape_cast %3 : vector<1x8x32xf32> to vector<8x32xf32>
    %5 = arith.truncf %4 : vector<8x32xf32> to vector<8x32xbf16>
    %c0_3 = arith.constant 0 : index
    %c0_4 = arith.constant 0 : index
    %6 = vector.load %arg7[%c0_3, %c0_4] : memref<32x64xbf16, #tpu.memory_space<vmem>>, vector<32x64xbf16>
    %cst = arith.constant dense<0.000000e+00> : vector<8x64xf32>
    %7 = tpu.matmul %5, %6, %cst {dimension_numbers = #tpu.dot_dimension_numbers<[1], [0], [0], [1], [0, 0, 1, 1], [], []>} : vector<8x32xbf16>, vector<32x64xbf16>, vector<8x64xf32> -> vector<8x64xf32>
    %c0_5 = arith.constant 0 : index
    %c0_6 = arith.constant 0 : index
    %8 = vector.load %arg8[%c0_5, %c0_6] : memref<1x64xf32, #tpu.memory_space<vmem>>, vector<1x64xf32>
    %9 = vector.broadcast %8 : vector<1x64xf32> to vector<8x64xf32>
    %10 = arith.addf %7, %9 : vector<8x64xf32>
    %11 = vector.extract_strided_slice %10 {offsets = [0, 0], sizes = [8, 32], strides = [1, 1]} : vector<8x64xf32> to vector<8x32xf32>
    %12 = vector.shape_cast %11 : vector<8x32xf32> to vector<8x4x8xf32>
    %13 = tpu.transpose %12, [1, 0, 2] : vector<8x4x8xf32> -> vector<4x8x8xf32>
    %14 = arith.truncf %13 : vector<4x8x8xf32> to vector<4x8x8xbf16>
    %15 = vector.extract_strided_slice %10 {offsets = [0, 32], sizes = [8, 32], strides = [1, 1]} : vector<8x64xf32> to vector<8x32xf32>
    %16 = vector.shape_cast %15 : vector<8x32xf32> to vector<8x4x8xf32>
    %17 = tpu.transpose %16, [1, 0, 2] : vector<8x4x8xf32> -> vector<4x8x8xf32>
    %18 = arith.truncf %17 : vector<4x8x8xf32> to vector<4x8x8xbf16>
    %c0_7 = arith.constant 0 : index
    %c0_8 = arith.constant 0 : index
    %c0_9 = arith.constant 0 : index
    %19 = vector.load %arg14[%c0_7, %c0_8, %c0_9] : memref<4x8x8xbf16, #tpu.memory_space<vmem>>, vector<4x8x8xbf16>
    "tpu.trace_start"() <{level = 10 : i32, message = "hqd,hkd->hqk"}> : () -> ()
    %cst_10 = arith.constant dense<0.000000e+00> : vector<4x8x8xf32>
    %20 = tpu.matmul %19, %14, %cst_10 {dimension_numbers = #tpu.dot_dimension_numbers<[2], [2], [1], [1], [0, 0, 0, 1, 1, 1], [0], [0]>} : vector<4x8x8xbf16>, vector<4x8x8xbf16>, vector<4x8x8xf32> -> vector<4x8x8xf32>
    "tpu.trace_stop"() : () -> ()
    %21 = tpu.iota {dimensions = array<i32: 0>} : vector<8x8xi32>
    %c8_i32 = arith.constant 8 : i32
    %22 = arith.muli %arg1, %c8_i32 : i32
    %23 = vector.broadcast %22 : i32 to vector<8x8xi32>
    %24 = arith.addi %21, %23 : vector<8x8xi32>
    %25 = tpu.iota {dimensions = array<i32: 1>} : vector<8x8xi32>
    %c8_i32_11 = arith.constant 8 : i32
    %26 = arith.muli %arg2, %c8_i32_11 : i32
    %27 = vector.broadcast %26 : i32 to vector<8x8xi32>
    %28 = arith.addi %25, %27 : vector<8x8xi32>
    %29 = arith.cmpi sgt, %28, %24 : vector<8x8xi32>
    %30 = vector.shape_cast %29 : vector<8x8xi1> to vector<1x8x8xi1>
    %cst_12 = arith.constant -1.000000e+09 : f32
    %31 = vector.shape_cast %30 : vector<1x8x8xi1> to vector<1x8x8xi1>
    %32 = vector.broadcast %31 : vector<1x8x8xi1> to vector<4x8x8xi1>
    %33 = vector.broadcast %cst_12 : f32 to vector<4x8x8xf32>
    %34 = arith.select %32, %33, %20 : vector<4x8x8xi1>, vector<4x8x8xf32>
    %c0_13 = arith.constant 0 : index
    %c0_14 = arith.constant 0 : index
    %c0_15 = arith.constant 0 : index
    %35 = vector.load %arg15[%c0_13, %c0_14, %c0_15] : memref<4x8x1xf32, #tpu.memory_space<vmem>>, vector<4x8x1xf32>
    %cst_16 = arith.constant dense<0xFF800000> : vector<4x8xf32>
    %36 = vector.multi_reduction <maximumf>, %34, %cst_16 [2] : vector<4x8x8xf32> to vector<4x8xf32>
    %37 = vector.shape_cast %36 : vector<4x8xf32> to vector<4x8x1xf32>
    %38 = arith.maximumf %35, %37 : vector<4x8x1xf32>
    %39 = arith.subf %35, %38 : vector<4x8x1xf32>
    %40 = math.exp %39 : vector<4x8x1xf32>
    %41 = vector.broadcast %38 : vector<4x8x1xf32> to vector<4x8x8xf32>
    %42 = arith.subf %34, %41 : vector<4x8x8xf32>
    %43 = math.exp %42 : vector<4x8x8xf32>
    %c0_17 = arith.constant 0 : index
    %c0_18 = arith.constant 0 : index
    %c0_19 = arith.constant 0 : index
    %44 = vector.load %arg16[%c0_17, %c0_18, %c0_19] : memref<4x8x1xf32, #tpu.memory_space<vmem>>, vector<4x8x1xf32>
    %45 = arith.mulf %40, %44 : vector<4x8x1xf32>
    %cst_20 = arith.constant dense<0.000000e+00> : vector<4x8xf32>
    %46 = vector.multi_reduction <add>, %43, %cst_20 [2] : vector<4x8x8xf32> to vector<4x8xf32>
    %47 = vector.shape_cast %46 : vector<4x8xf32> to vector<4x8x1xf32>
    %48 = arith.addf %45, %47 : vector<4x8x1xf32>
    %c0_21 = arith.constant 0 : index
    %c0_22 = arith.constant 0 : index
    %c0_23 = arith.constant 0 : index
    %49 = vector.load %arg16[%c0_21, %c0_22, %c0_23] : memref<4x8x1xf32, #tpu.memory_space<vmem>>, vector<4x8x1xf32>
    tpu.vector_store %arg16[%c0_21, %c0_22, %c0_23], %48 {strides = array<i32>} : memref<4x8x1xf32, #tpu.memory_space<vmem>>, vector<4x8x1xf32>,
    %c0_24 = arith.constant 0 : index
    %c0_25 = arith.constant 0 : index
    %c0_26 = arith.constant 0 : index
    %50 = vector.load %arg17[%c0_24, %c0_25, %c0_26] : memref<4x8x8xf32, #tpu.memory_space<vmem>>, vector<4x8x8xf32>
    %51 = vector.broadcast %40 : vector<4x8x1xf32> to vector<4x8x8xf32>
    %52 = arith.mulf %51, %50 : vector<4x8x8xf32>
    %53 = arith.truncf %43 : vector<4x8x8xf32> to vector<4x8x8xbf16>
    "tpu.trace_start"() <{level = 10 : i32, message = "hqk,hkd->hqd"}> : () -> ()
    %cst_27 = arith.constant dense<0.000000e+00> : vector<4x8x8xf32>
    %54 = tpu.matmul %53, %18, %cst_27 {dimension_numbers = #tpu.dot_dimension_numbers<[2], [1], [1], [2], [0, 0, 0, 1, 1, 2], [0], [0]>} : vector<4x8x8xbf16>, vector<4x8x8xbf16>, vector<4x8x8xf32> -> vector<4x8x8xf32>
    "tpu.trace_stop"() : () -> ()
    %55 = arith.addf %52, %54 : vector<4x8x8xf32>
    %c0_28 = arith.constant 0 : index
    %c0_29 = arith.constant 0 : index
    %c0_30 = arith.constant 0 : index
    %56 = vector.load %arg17[%c0_28, %c0_29, %c0_30] : memref<4x8x8xf32, #tpu.memory_space<vmem>>, vector<4x8x8xf32>
    tpu.vector_store %arg17[%c0_28, %c0_29, %c0_30], %55 {strides = array<i32>} : memref<4x8x8xf32, #tpu.memory_space<vmem>>, vector<4x8x8xf32>,
    %c0_31 = arith.constant 0 : index
    %c0_32 = arith.constant 0 : index
    %c0_33 = arith.constant 0 : index
    %57 = vector.load %arg15[%c0_31, %c0_32, %c0_33] : memref<4x8x1xf32, #tpu.memory_space<vmem>>, vector<4x8x1xf32>
    tpu.vector_store %arg15[%c0_31, %c0_32, %c0_33], %38 {strides = array<i32>} : memref<4x8x1xf32, #tpu.memory_space<vmem>>, vector<4x8x1xf32>,
    %c0_i32_34 = arith.constant 0 : i32
    %58 = arith.cmpi eq, %arg2, %c0_i32_34 : i32
    %59 = arith.extui %58 : i1 to i32
    %c0_i32_35 = arith.constant 0 : i32
    %60 = arith.cmpi ne, %59, %c0_i32_35 : i32
    scf.if %60 {
      %c0_36 = arith.constant 0 : index
      %c0_37 = arith.constant 0 : index
      %c0_38 = arith.constant 0 : index
      %61 = vector.load %arg17[%c0_36, %c0_37, %c0_38] : memref<4x8x8xf32, #tpu.memory_space<vmem>>, vector<4x8x8xf32>
      %c0_39 = arith.constant 0 : index
      %c0_40 = arith.constant 0 : index
      %c0_41 = arith.constant 0 : index
      %62 = vector.load %arg16[%c0_39, %c0_40, %c0_41] : memref<4x8x1xf32, #tpu.memory_space<vmem>>, vector<4x8x1xf32>
      %63 = tpu.reciprocal %62 {approx = true} : vector<4x8x1xf32> -> vector<4x8x1xf32>
      %64 = vector.broadcast %63 : vector<4x8x1xf32> to vector<4x8x8xf32>
      %65 = arith.mulf %61, %64 : vector<4x8x8xf32>
      %66 = tpu.transpose %65, [1, 0, 2] : vector<4x8x8xf32> -> vector<8x4x8xf32>
      %67 = vector.shape_cast %66 : vector<8x4x8xf32> to vector<8x32xf32>
      %68 = arith.truncf %67 : vector<8x32xf32> to vector<8x32xbf16>
      %c0_42 = arith.constant 0 : index
      %c0_43 = arith.constant 0 : index
      %69 = vector.load %arg9[%c0_42, %c0_43] : memref<32x32xbf16, #tpu.memory_space<vmem>>, vector<32x32xbf16>
      %cst_44 = arith.constant dense<0.000000e+00> : vector<8x32xf32>
      %70 = tpu.matmul %68, %69, %cst_44 {dimension_numbers = #tpu.dot_dimension_numbers<[1], [0], [0], [1], [0, 0, 1, 1], [], []>} : vector<8x32xbf16>, vector<32x32xbf16>, vector<8x32xf32> -> vector<8x32xf32>
      %c0_45 = arith.constant 0 : index
      %c0_46 = arith.constant 0 : index
      %71 = vector.load %arg10[%c0_45, %c0_46] : memref<1x32xf32, #tpu.memory_space<vmem>>, vector<1x32xf32>
      %72 = vector.broadcast %71 : vector<1x32xf32> to vector<8x32xf32>
      %73 = arith.addf %70, %72 : vector<8x32xf32>
      %c0_47 = arith.constant 0 : index
      %c0_48 = arith.constant 0 : index
      %c0_49 = arith.constant 0 : index
      %74 = vector.load %arg3[%c0_47, %c0_48, %c0_49] : memref<1x8x32xf32, #tpu.memory_space<vmem>>, vector<1x8x32xf32>
      %75 = vector.shape_cast %74 : vector<1x8x32xf32> to vector<8x32xf32>
      %76 = arith.addf %75, %73 : vector<8x32xf32>
      %cst_50 = arith.constant dense<0.000000e+00> : vector<8xf32>
      %77 = vector.multi_reduction <add>, %76, %cst_50 [1] : vector<8x32xf32> to vector<8xf32>
      %78 = vector.shape_cast %77 : vector<8xf32> to vector<8x1xf32>
      %cst_51 = arith.constant 3.200000e+01 : f32
      %79 = vector.broadcast %cst_51 : f32 to vector<8x1xf32>
      %80 = arith.divf %78, %79 : vector<8x1xf32>
      %81 = vector.broadcast %80 : vector<8x1xf32> to vector<8x32xf32>
      %82 = arith.subf %76, %81 : vector<8x32xf32>
      %83 = arith.mulf %82, %82 : vector<8x32xf32>
      %cst_52 = arith.constant dense<0.000000e+00> : vector<8xf32>
      %84 = vector.multi_reduction <add>, %83, %cst_52 [1] : vector<8x32xf32> to vector<8xf32>
      %85 = vector.shape_cast %84 : vector<8xf32> to vector<8x1xf32>
      %cst_53 = arith.constant 3.200000e+01 : f32
      %86 = vector.broadcast %cst_53 : f32 to vector<8x1xf32>
      %87 = arith.divf %85, %86 : vector<8x1xf32>
      %cst_54 = arith.constant 9.99999974E-6 : f32
      %88 = vector.broadcast %cst_54 : f32 to vector<8x1xf32>
      %89 = arith.addf %87, %88 : vector<8x1xf32>
      %90 = math.rsqrt %89 : vector<8x1xf32>
      %91 = vector.broadcast %90 : vector<8x1xf32> to vector<8x32xf32>
      %92 = arith.mulf %82, %91 : vector<8x32xf32>
      %c0_55 = arith.constant 0 : index
      %c0_56 = arith.constant 0 : index
      %93 = vector.load %arg11[%c0_55, %c0_56] : memref<1x32xf32, #tpu.memory_space<vmem>>, vector<1x32xf32>
      %94 = vector.broadcast %93 : vector<1x32xf32> to vector<8x32xf32>
      %95 = arith.mulf %92, %94 : vector<8x32xf32>
      %c0_57 = arith.constant 0 : index
      %c0_58 = arith.constant 0 : index
      %96 = vector.load %arg12[%c0_57, %c0_58] : memref<1x32xf32, #tpu.memory_space<vmem>>, vector<1x32xf32>
      %97 = vector.broadcast %96 : vector<1x32xf32> to vector<8x32xf32>
      %98 = arith.addf %95, %97 : vector<8x32xf32>
      %c0_59 = arith.constant 0 : index
      %c0_60 = arith.constant 0 : index
      %c0_61 = arith.constant 0 : index
      %99 = vector.load %arg13[%c0_59, %c0_60, %c0_61] : memref<1x8x32xf32, #tpu.memory_space<vmem>>, vector<1x8x32xf32>
      %100 = vector.shape_cast %99 : vector<1x8x32xf32> to vector<8x32xf32>
      %101 = vector.shape_cast %98 : vector<8x32xf32> to vector<1x8x32xf32>
      tpu.vector_store %arg13[%c0_59, %c0_60, %c0_61], %101 {strides = array<i32>} : memref<1x8x32xf32, #tpu.memory_space<vmem>>, vector<1x8x32xf32>,
    } else {
    }
    return
  }
  func.func @transform_0(%arg0: i32, %arg1: i32, %arg2: i32) -> (i32, i32, i32) {
    %c0_i32 = arith.constant 0 : i32
    %c0_i32_0 = arith.constant 0 : i32
    return %arg0, %arg1, %c0_i32 : i32, i32, i32
  }
  func.func @transform_1(%arg0: i32, %arg1: i32, %arg2: i32) -> (i32, i32, i32) {
    %c0_i32 = arith.constant 0 : i32
    %c0_i32_0 = arith.constant 0 : i32
    return %arg0, %arg2, %c0_i32 : i32, i32, i32
  }
  func.func @transform_2(%arg0: i32, %arg1: i32, %arg2: i32) -> (i32, i32) {
    %c0_i32 = arith.constant 0 : i32
    %c0_i32_0 = arith.constant 0 : i32
    %c0_i32_1 = arith.constant 0 : i32
    return %c0_i32, %c0_i32_0 : i32, i32
  }
  func.func @transform_3(%arg0: i32, %arg1: i32, %arg2: i32) -> (i32, i32) {
    %c0_i32 = arith.constant 0 : i32
    %c0_i32_0 = arith.constant 0 : i32
    %c0_i32_1 = arith.constant 0 : i32
    return %c0_i32, %c0_i32_0 : i32, i32
  }
  func.func @transform_4(%arg0: i32, %arg1: i32, %arg2: i32) -> (i32, i32) {
    %c0_i32 = arith.constant 0 : i32
    %c0_i32_0 = arith.constant 0 : i32
    %c0_i32_1 = arith.constant 0 : i32
    return %c0_i32, %c0_i32_0 : i32, i32
  }
  func.func @transform_5(%arg0: i32, %arg1: i32, %arg2: i32) -> (i32, i32) {
    %c0_i32 = arith.constant 0 : i32
    %c0_i32_0 = arith.constant 0 : i32
    %c0_i32_1 = arith.constant 0 : i32
    return %c0_i32, %c0_i32_0 : i32, i32
  }
  func.func @transform_6(%arg0: i32, %arg1: i32, %arg2: i32) -> (i32, i32) {
    %c0_i32 = arith.constant 0 : i32
    %c0_i32_0 = arith.constant 0 : i32
    %c0_i32_1 = arith.constant 0 : i32
    return %c0_i32, %c0_i32_0 : i32, i32
  }
  func.func @transform_7(%arg0: i32, %arg1: i32, %arg2: i32) -> (i32, i32) {
    %c0_i32 = arith.constant 0 : i32
    %c0_i32_0 = arith.constant 0 : i32
    %c0_i32_1 = arith.constant 0 : i32
    return %c0_i32, %c0_i32_0 : i32, i32
  }
  func.func @transform_8(%arg0: i32, %arg1: i32, %arg2: i32) -> (i32, i32) {
    %c0_i32 = arith.constant 0 : i32
    %c0_i32_0 = arith.constant 0 : i32
    %c0_i32_1 = arith.constant 0 : i32
    return %c0_i32, %c0_i32_0 : i32, i32
  }
  func.func @transform_9(%arg0: i32, %arg1: i32, %arg2: i32) -> (i32, i32) {
    %c0_i32 = arith.constant 0 : i32
    %c0_i32_0 = arith.constant 0 : i32
    %c0_i32_1 = arith.constant 0 : i32
    return %c0_i32, %c0_i32_0 : i32, i32
  }
  func.func @transform_10(%arg0: i32, %arg1: i32, %arg2: i32) -> (i32, i32, i32) {
    %c0_i32 = arith.constant 0 : i32
    %c0_i32_0 = arith.constant 0 : i32
    return %arg0, %arg1, %c0_i32 : i32, i32, i32
  }
}

</mosaic_0001>

<bundles_post_ra>
// kernel: tpu_custom_call.1
= control target key start
LH: loop header
LB: loop body
LE: loop exit
PB: predicated region body
PF: predicated region fallthrough
CT: control target
= control target key end

     0   :  { %s3707_s0 = inlined_call_operand.hbm [shape: f32[2,8,32], index: 0, kind: input, shape index: {}]   ;;  %s3708_s1 = inlined_call_operand.hbm [shape: f32[2,8,32], index: 1, kind: input, shape index: {}]   ;;  %s3709_s2 = inlined_call_operand.hbm [shape: bf16[32,32], index: 2, kind: input, shape index: {}]   ;;  %s3710_s3 = inlined_call_operand.hbm [shape: f32[1,32], index: 3, kind: input, shape index: {}]   ;;  %s3711_s4 = inlined_call_operand.hbm [shape: bf16[32,64], index: 4, kind: input, shape index: {}]   ;;  %s3712_s5 = inlined_call_operand.hbm [shape: f32[1,64], index: 5, kind: input, shape index: {}]   ;;  %s3713_s6 = inlined_call_operand.hbm [shape: bf16[32,32], index: 6, kind: input, shape index: {}]   ;;  %s3714_s7 = inlined_call_operand.hbm [shape: f32[1,32], index: 7, kind: input, shape index: {}]   ;;  %s3715_s8 = inlined_call_operand.hbm [shape: f32[1,32], index: 8, kind: input, shape index: {}]   ;;  %s3716_s9 = inlined_call_operand.hbm [shape: f32[1,32], index: 9, kind: input, shape index: {}]   ;;  %s3717_s10 = inlined_call_operand.hbm [shape: f32[2,8,32], index: 10, kind: output, shape index: {}]  }
   0x1   :  { %3727 = sst [smem:[#allocation34_spill]] %s3708_s1 }
   0x2   :  { %3728 = sst [smem:[#allocation35_spill]] %s3709_s2 }
   0x3   :  { %3729 = sst [smem:[#allocation36_spill]] %s3710_s3 }
   0x4   :  { %3730 = sst [smem:[#allocation37_spill]] %s3711_s4 }
   0x5   :  { %3731 = sst [smem:[#allocation38_spill]] %s3712_s5 }
   0x6   :  { %3732 = sst [smem:[#allocation39_spill]] %s3713_s6 }
   0x7   :  { %3733 = sst [smem:[#allocation40_spill]] %s3714_s7 }
   0x8   :  { %3734 = sst [smem:[#allocation41_spill]] %s3717_s10 }
   0x9   :  { %15 = vsyncpa [#allocation7], 0 }
   0xa   :  { %17 = vsyncpa [#allocation7 + $0x1], 0 }
   0xb   :  { %18 = vsyncpa [#allocation10], 0 }
   0xc   :  { %20 = vsyncpa [#allocation10 + $0x1], 0 }
   0xd   :  { %21 = vsyncpa [#allocation13], 0 }
   0xe   :  { %22 = vsyncpa [#allocation16], 0 }
   0xf   :  { %23 = vsyncpa [#allocation19], 0 }
  0x10   :  { %24 = vsyncpa [#allocation22], 0 }
  0x11   :  { %25 = vsyncpa [#allocation8], 0 }
  0x12   :  { %27 = vsyncpa [#allocation8 + $0x1], 0  ;;  %s3007_s13 = smov 0   ;;  %s3009_s14 = smov 0  }
  0x13   :  { %s3011_s15 = smov 0   ;;  %s3013_s16 = smov 0  }
  0x14   :  { %s3015_s17 = smov 0   ;;  %s3017_s18 = smov 0  }
  0x15 LB: > { %3735 = sst [smem:[#allocation32_spill]] %s2916_s16  ;;  %s3038_s19 = sadd.s32 4294967295, %s2924_s18   ;;  %s2924_s18 = sphi %s3017_s18, %s33_s18   ;;  %s2920_s17 = sphi %s3015_s17, %s3776_s17   ;;  %s2916_s16 = sphi %s3013_s16, %s3775_s16   ;;  %s2912_s15 = sphi %s3011_s15, %s3774_s15   ;;  %s2908_s14 = sphi %s3009_s14, %s3773_s14   ;;  %s2904_s13 = sphi %s3007_s13, %s3772_s13  }
  0x16   : > { %p2180_p0 = scmp.ge.s32.totalorder %s2924_s18, 1  ;;  %p3721_p1 = scmp.eq.s32.totalorder %s3038_s19, 0 }
  0x17   : > { %p309_p2 = scmp.lt.s32.totalorder %s2924_s18, 3  ;;  %s2926_s21 = smov [#allocation11]  }
  0x18   : > { %s321_s22 = sshll.u32 %s2926_s21, 4  ;;  %s2927_s24 = smov [#allocation12]   ;;  %s3047_s22 = int_to_ptr.vmem [resolvable:$true] %s321_s22 }
  0x19   : > { %p3043_p3 = pnand %p2180_p0, %p309_p2  ;;  %s335_s25 = sshll.u32 %s2927_s24, 4  ;;  %s3058_s25 = int_to_ptr.vmem [resolvable:$true] %s335_s25 }
  0x1a   : > { %s2928_s26 = smov [#allocation15]   ;;  %s3739_s2 = sld [smem:[#allocation35_spill]] }
  0x1b   : > { %s3736_s20 = scalar_select %p3043_p3, 1, 0 }
  0x1c   : > { %p2375_p4 = pneg %p3043_p3  ;;  %s3060_s27 = sshll.u32 %s2928_s26, 4  ;;  %s360_s27 = int_to_ptr.vmem [resolvable:$true] %s3060_s27 }
  0x1d   : > { %3737 = sst [smem:[#allocation33_spill]] %s3736_s20 }
  0x1e   : > { %p3054_p6 = pnand %p2375_p4, %p3721_p1 }
  0x20   : > { %s2534_s30 = scalar_lea.hbm %s3739_s2, 256  ;;  %p3070_p8 = pneg %p3054_p6 }
  0x21   : > { %p2535_p7 = scmp.ne.s32.totalorder %s3739_s2, %s2534_s30  ;;  %p2541_p11 = scmp.lt.u32.totalorder %s2534_s30, %s3739_s2 }
  0x23   : > { %p2537_p9 = pnand %p3070_p8, %p2535_p7 }
  0x25   : > { %p2538_p10 = pneg %p2537_p9 }
  0x27   : > { %p2543_p12 = pnand %p2541_p11, %p2538_p10 }
  0x29   : > { %2546 = shalt.err (!%p2543_p12)
}
  0x2a   : > { %s2547_s28 = scalar_lea.vmem %s3047_s22, 256  ;;  %p2555_p4 = scmp.lt.s32.totalorder %s3047_s22, %s3047_s22 }
  0x2b   : > { %p2548_p13 = scmp.ne.s32.totalorder %s3047_s22, %s2547_s28  ;;  %p2556_p5 = scmp.lt.s32.totalorder %s2547_s28, %s2547_s28 }
  0x2d   : > { %p2550_p0 = pnand %p2548_p13, %p3070_p8  ;;  %p2557_p7 = por %p2556_p5, %p2555_p4 }
  0x2f   : > { %p2551_p2 = pneg %p2550_p0 }
  0x31   : > { %p2558_p9 = pnand %p2557_p7, %p2551_p2 }
  0x33   : > { %2561 = shalt.err (!%p2558_p9)
}
  0x34   : > { %s3723_s29 = smov 64   ;;  %s2930_s30 = smov 4  }
  0x35   : > { %2378 = dma.hbm_to_vmem [thread:$0]  (!%p3054_p6), %s3739_s2, 256, %s3047_s22, [#allocation10], %s3723_s29, %s3723_s29, %s2930_s30  }
  0x36   : > { %s3741_s3 = sld [smem:[#allocation36_spill]] }
  0x3c   : > { %s2562_s28 = scalar_lea.hbm %s3741_s3, 16 }
  0x3d   : > { %p2563_p5 = scmp.ne.s32.totalorder %s3741_s3, %s2562_s28  ;;  %p2569_p12 = scmp.lt.u32.totalorder %s2562_s28, %s3741_s3 }
  0x3f   : > { %p2565_p10 = pnand %p2563_p5, %p3070_p8 }
  0x41   : > { %p2566_p11 = pneg %p2565_p10 }
  0x43   : > { %p2571_p13 = pnand %p2569_p12, %p2566_p11 }
  0x45   : > { %2574 = shalt.err (!%p2571_p13)
}
  0x46   : > { %s2575_s22 = scalar_lea.vmem %s3058_s25, 16  ;;  %s2582_s10 = scalar_lea.vmem %s3058_s25, 32 }
  0x47   : > { %p2576_p0 = scmp.ne.s32.totalorder %s3058_s25, %s2575_s22  ;;  %p2583_p7 = scmp.lt.s32.totalorder %s3058_s25, %s3058_s25 }
  0x48   : > { %p2584_p9 = scmp.lt.s32.totalorder %s2582_s10, %s2575_s22 }
  0x49   : > { %p2578_p2 = pnand %p2576_p0, %p3070_p8 }
  0x4a   : > { %p2585_p5 = por %p2584_p9, %p2583_p7 }
  0x4b   : > { %p2579_p4 = pneg %p2578_p2 }
  0x4d   : > { %p2586_p10 = pnand %p2585_p5, %p2579_p4 }
  0x4f   : > { %2589 = shalt.err (!%p2586_p10)
}
  0x50   : > { %2381 = dma.hbm_to_vmem [thread:$0]  (!%p3054_p6), %s3741_s3, 16, %s3058_s25, [#allocation13]  }
  0x51   : > { %s3742_s5 = sld [smem:[#allocation38_spill]] }
  0x57   : > { %s2590_s12 = scalar_lea.hbm %s3742_s5, 16 }
  0x58   : > { %p2591_p11 = scmp.ne.s32.totalorder %s3742_s5, %s2590_s12  ;;  %p2597_p0 = scmp.lt.u32.totalorder %s2590_s12, %s3742_s5 }
  0x5a   : > { %p2593_p12 = pnand %p2591_p11, %p3070_p8 }
  0x5c   : > { %p2594_p13 = pneg %p2593_p12 }
  0x5e   : > { %p2599_p2 = pnand %p2597_p0, %p2594_p13 }
  0x60   : > { %2602 = shalt.err (!%p2599_p2)
}
  0x61   : > { %s2603_s10 = scalar_lea.vmem %s360_s27, 16  ;;  %s2610_s25 = scalar_lea.vmem %s360_s27, 32 }
  0x62   : > { %p2604_p4 = scmp.ne.s32.totalorder %s360_s27, %s2603_s10  ;;  %p2611_p5 = scmp.lt.s32.totalorder %s360_s27, %s360_s27 }
  0x63   : > { %p2612_p10 = scmp.lt.s32.totalorder %s2610_s25, %s2603_s10 }
  0x64   : > { %p2606_p7 = pnand %p2604_p4, %p3070_p8 }
  0x65   : > { %p2613_p1 = por %p2612_p10, %p2611_p5 }
  0x66   : > { %p2607_p9 = pneg %p2606_p7 }
  0x68   : > { %p2614_p3 = pnand %p2613_p1, %p2607_p9 }
  0x6a   : > { %2617 = shalt.err (!%p2614_p3)
}
  0x6b   : > { %2387 = dma.hbm_to_vmem [thread:$0]  (!%p3054_p6), %s3742_s5, 16, %s360_s27, [#allocation16]  }
  0x6c   : > { %s2931_s20 = smov [#allocation18]   ;;  %s2932_s12 = smov [#allocation14]  }
  0x6d   : > { %s383_s11 = sshll.u32 %s2931_s20, 4  ;;  %s345_s24 = sshll.u32 %s2932_s12, 4  ;;  %s384_s11 = int_to_ptr.vmem [resolvable:$true] %s383_s11  ;;  %s346_s24 = int_to_ptr.vmem [resolvable:$true] %s345_s24 }
  0x6e   : > { %s3743_s7 = sld [smem:[#allocation40_spill]] }
  0x74   : > { %s2618_s22 = scalar_lea.hbm %s3743_s7, 16 }
  0x75   : > { %p2619_p1 = scmp.ne.s32.totalorder %s3743_s7, %s2618_s22  ;;  %p2625_p12 = scmp.lt.u32.totalorder %s2618_s22, %s3743_s7 }
  0x77   : > { %p2621_p3 = pnand %p2619_p1, %p3070_p8 }
  0x79   : > { %p2622_p11 = pneg %p2621_p3 }
  0x7b   : > { %p2627_p13 = pnand %p2625_p12, %p2622_p11 }
  0x7d   : > { %2630 = shalt.err (!%p2627_p13)
}
  0x7e   : > { %s2631_s27 = scalar_lea.vmem %s384_s11, 16  ;;  %s2638_s16 = scalar_lea.vmem %s384_s11, 32 }
  0x7f   : > { %p2632_p0 = scmp.ne.s32.totalorder %s384_s11, %s2631_s27  ;;  %p2639_p7 = scmp.lt.s32.totalorder %s384_s11, %s384_s11 }
  0x80   : > { %p2640_p9 = scmp.lt.s32.totalorder %s2638_s16, %s2631_s27 }
  0x81   : > { %p2634_p2 = pnand %p2632_p0, %p3070_p8 }
  0x82   : > { %p2641_p5 = por %p2640_p9, %p2639_p7 }
  0x83   : > { %p2635_p4 = pneg %p2634_p2 }
  0x85   : > { %p2642_p10 = pnand %p2641_p5, %p2635_p4 }
  0x87   : > { %2645 = shalt.err (!%p2642_p10)
}
  0x88   : > { %2393 = dma.hbm_to_vmem [thread:$0]  (!%p3054_p6), %s3743_s7, 16, %s384_s11, [#allocation19]  }
  0x89   : > { %s3744_s4 = sld [smem:[#allocation37_spill]] }
  0x8f   : > { %s2646_s28 = scalar_lea.hbm %s3744_s4, 256 }
  0x90   : > { %p2647_p1 = scmp.ne.s32.totalorder %s3744_s4, %s2646_s28  ;;  %p2653_p12 = scmp.lt.u32.totalorder %s2646_s28, %s3744_s4 }
  0x92   : > { %p2649_p3 = pnand %p2647_p1, %p3070_p8 }
  0x94   : > { %p2650_p11 = pneg %p2649_p3 }
  0x96   : > { %p2655_p13 = pnand %p2653_p12, %p2650_p11 }
  0x98   : > { %2658 = shalt.err (!%p2655_p13)
}
  0x99   : > { %s2659_s27 = scalar_lea.vmem %s346_s24, 256  ;;  %p2667_p7 = scmp.lt.s32.totalorder %s346_s24, %s346_s24 }
  0x9a   : > { %p2660_p0 = scmp.ne.s32.totalorder %s346_s24, %s2659_s27  ;;  %p2668_p9 = scmp.lt.s32.totalorder %s2659_s27, %s2659_s27 }
  0x9c   : > { %p2662_p2 = pnand %p2660_p0, %p3070_p8  ;;  %p2669_p5 = por %p2668_p9, %p2667_p7 }
  0x9e   : > { %p2663_p4 = pneg %p2662_p2 }
  0xa0   : > { %p2670_p10 = pnand %p2669_p5, %p2663_p4 }
  0xa2   : > { %2673 = shalt.err (!%p2670_p10)
}
  0xa3   : > { %s3745_s11 = smov 64   ;;  %s2933_s12 = smov [#allocation17]  }
  0xa4   : > { %2384 = dma.hbm_to_vmem [thread:$0]  (!%p3054_p6), %s3744_s4, 256, %s346_s24, [#allocation13], %s3745_s11, %s3745_s11, %s2930_s30  }
  0xa5   : > { %s369_s29 = sshll.u32 %s2933_s12, 4  ;;  %s2934_s26 = smov [#allocation20]   ;;  %s370_s29 = int_to_ptr.vmem [resolvable:$true] %s369_s29 }
  0xa6   : > { %s394_s28 = sshll.u32 %s2934_s26, 4  ;;  %s3746_s6 = sld [smem:[#allocation39_spill]]  ;;  %s395_s28 = int_to_ptr.vmem [resolvable:$true] %s394_s28 }
  0xac   : > { %s2674_s25 = scalar_lea.hbm %s3746_s6, 256 }
  0xad   : > { %p2675_p1 = scmp.ne.s32.totalorder %s3746_s6, %s2674_s25  ;;  %p2681_p12 = scmp.lt.u32.totalorder %s2674_s25, %s3746_s6 }
  0xaf   : > { %p2677_p3 = pnand %p2675_p1, %p3070_p8 }
  0xb1   : > { %p2678_p11 = pneg %p2677_p3 }
  0xb3   : > { %p2683_p13 = pnand %p2681_p12, %p2678_p11 }
  0xb5   : > { %2686 = shalt.err (!%p2683_p13)
}
  0xb6   : > { %s2687_s24 = scalar_lea.vmem %s370_s29, 256  ;;  %p2695_p7 = scmp.lt.s32.totalorder %s370_s29, %s370_s29 }
  0xb7   : > { %p2688_p0 = scmp.ne.s32.totalorder %s370_s29, %s2687_s24  ;;  %p2696_p9 = scmp.lt.s32.totalorder %s2687_s24, %s2687_s24 }
  0xb9   : > { %p2690_p2 = pnand %p2688_p0, %p3070_p8  ;;  %p2697_p5 = por %p2696_p9, %p2695_p7 }
  0xbb   : > { %p2691_p4 = pneg %p2690_p2 }
  0xbd   : > { %p2698_p10 = pnand %p2697_p5, %p2691_p4 }
  0xbf   : > { %2701 = shalt.err (!%p2698_p10)
}
  0xc0   : > { %2390 = dma.hbm_to_vmem [thread:$0]  (!%p3054_p6), %s3746_s6, 256, %s370_s29, [#allocation16], %s3745_s11, %s3745_s11, %s2930_s30  }
  0xc1   : > { %s2702_s22 = scalar_lea.hbm %s3715_s8, 16 }
  0xc2   : > { %p2703_p1 = scmp.ne.s32.totalorder %s3715_s8, %s2702_s22  ;;  %p2709_p12 = scmp.lt.u32.totalorder %s2702_s22, %s3715_s8 }
  0xc4   : > { %p2705_p3 = pnand %p2703_p1, %p3070_p8 }
  0xc6   : > { %p2706_p11 = pneg %p2705_p3 }
  0xc8   : > { %p2711_p13 = pnand %p2709_p12, %p2706_p11 }
  0xca   : > { %2714 = shalt.err (!%p2711_p13)
}
  0xcb   : > { %s2715_s16 = scalar_lea.vmem %s395_s28, 16  ;;  %s2722_s30 = scalar_lea.vmem %s395_s28, 32 }
  0xcc   : > { %p2716_p0 = scmp.ne.s32.totalorder %s395_s28, %s2715_s16  ;;  %p2723_p7 = scmp.lt.s32.totalorder %s395_s28, %s395_s28 }
  0xcd   : > { %p2724_p9 = scmp.lt.s32.totalorder %s2722_s30, %s2715_s16 }
  0xce   : > { %p2718_p2 = pnand %p2716_p0, %p3070_p8 }
  0xcf   : > { %p2725_p5 = por %p2724_p9, %p2723_p7 }
  0xd0   : > { %p2719_p4 = pneg %p2718_p2 }
  0xd2   : > { %p2726_p10 = pnand %p2725_p5, %p2719_p4 }
  0xd4   : > { %2729 = shalt.err (!%p2726_p10)
}
  0xd5   : > { %2396 = dma.hbm_to_vmem [thread:$0]  (!%p3054_p6), %s3715_s8, 16, %s395_s28, [#allocation19]  }
  0xd6   : > { %s2935_s24 = smov [#allocation21]   ;;  %s2730_s26 = scalar_lea.hbm %s3716_s9, 16 }
  0xd7   : > { %s405_s2 = sshll.u32 %s2935_s24, 4  ;;  %p2731_p1 = scmp.ne.s32.totalorder %s3716_s9, %s2730_s26  ;;  %s406_s2 = int_to_ptr.vmem [resolvable:$true] %s405_s2 }
  0xd8   : > { %p2737_p12 = scmp.lt.u32.totalorder %s2730_s26, %s3716_s9 }
  0xd9   : > { %p2733_p3 = pnand %p2731_p1, %p3070_p8 }
  0xdb   : > { %p2734_p11 = pneg %p2733_p3 }
  0xdd   : > { %p2739_p13 = pnand %p2737_p12, %p2734_p11 }
  0xdf   : > { %2742 = shalt.err (!%p2739_p13)
}
  0xe0   : > { %s2743_s28 = scalar_lea.vmem %s406_s2, 16  ;;  %s2750_s27 = scalar_lea.vmem %s406_s2, 32 }
  0xe1   : > { %p2744_p0 = scmp.ne.s32.totalorder %s406_s2, %s2743_s28  ;;  %p2751_p7 = scmp.lt.s32.totalorder %s406_s2, %s406_s2 }
  0xe2   : > { %p2752_p9 = scmp.lt.s32.totalorder %s2750_s27, %s2743_s28 }
  0xe3   : > { %p2746_p2 = pnand %p2744_p0, %p3070_p8 }
  0xe4   : > { %p2753_p5 = por %p2752_p9, %p2751_p7 }
  0xe5   : > { %p2747_p4 = pneg %p2746_p2 }
  0xe7   : > { %p2754_p10 = pnand %p2753_p5, %p2747_p4 }
  0xe9   : > { %2757 = shalt.err (!%p2754_p10)
}
  0xea   : > { %2399 = dma.hbm_to_vmem [thread:$0]  (!%p3054_p6), %s3716_s9, 16, %s406_s2, [#allocation22]  }
  0xeb   : > { %s2179_s21 = sadd.s32 4294967294, %s2924_s18   ;;  %s52_s11 = sadd.s32 1, %s2920_s17 }
  0xec   : > { %p54_p8 = scmp.ge.s32.totalorder %s52_s11, 2  ;;  %s61_s23 = sadd.s32 1, %s2912_s15 }
  0xed   : > { %p68_p1 = scmp.ne.s32.totalorder %s2912_s15, %s2908_s14  ;;  %p69_p3 = scmp.eq.s32.totalorder %s2924_s18, 0 }
  0xee   : > { %s3778_s11 = smov (%p54_p8, %s52_s11), 0  ;;  %p74_p12 = scmp.ne.s32.totalorder %s2908_s14, %s2904_s13 }
  0xef   : > { %p3241_p11 = por %p69_p3, %p68_p1  ;;  %s56_s24 = ssub.s32 %s2920_s17, %s3778_s11 }
  0xf0   : > { %p296_p6 = scmp.eq.s32.totalorder %s3038_s19, 1  ;;  %p59_p13 = scmp.eq.s32.totalorder %s56_s24, 0 }
  0xf1   : > { %p3748_p0 = scmp.eq.s32.totalorder %s3038_s19, 0  ;;  %p302_p7 = scmp.eq.s32.totalorder %s2179_s21, 1 }
  0xf2   : > { %p3256_p4 = por %p296_p6, %p68_p1  ;;  %p2419_p5 = scmp.lt.s32.totalorder %s2924_s18, 2 }
  0xf3   : > { %p3252_p2 = por %p3748_p0, %p74_p12  ;;  %p3263_p9 = por %p302_p7, %p74_p12 }
  0xf4   : > { %s3750_s20 = scalar_select %p3256_p4, 1, 0 }
  0xf5   : > { %s3749_s2 = scalar_select %p3252_p2, 1, 0 }
  0xf6   : > { %s3261_s12 = scalar_select %p59_p13, %s2912_s15, %s61_s23  }
  0xf7   : > { %s3751_s26 = scalar_select %p3263_p9, 1, 0 }
  0xf8   : > { %s416_s22 = sand.u32 1, %s2912_s15   ;;  %s2191_s10 = sshll.u32 %s2920_s17, 7 }
  0xf9   : > { %s3270_s25 = sshll.u32 %s416_s22, 3  ;;  %s3275_s27 = scalar_lea.hbm %s3707_s0, %s2191_s10 }
  0xfa   : > { %s420_s16 = scalar_lea.vmem [#allocation6], %s3270_s25  ;;  %p3280_p10 = pnand %p2419_p5, %p3241_p11 }
  0xfb   : > { %s428_s30 = sshll.u32 %s420_s16, 4  ;;  %s3753_s1 = sld [smem:[#allocation34_spill]]  ;;  %s3284_s30 = int_to_ptr.vmem [resolvable:$true] %s428_s30 }
  0xfc   : > { %s417_s3 = scalar_lea.sflag [#allocation7], %s416_s22  ;;  %s2758_s4 = scalar_lea.hbm %s3275_s27, 128 }
  0xfd   : > { %p2759_p8 = scmp.ne.s32.totalorder %s3275_s27, %s2758_s4  ;;  %p2760_p1 = pneg %p3280_p10 }
  0xfe   : > { %s2763_s5 = scalar_lea.hbm %s3707_s0, 256  ;;  %p2764_p12 = scmp.lt.u32.totalorder %s3275_s27, %s3707_s0 }
  0xff   : > { %p2761_p3 = pnand %p2760_p1, %p2759_p8  ;;  %p2765_p6 = scmp.lt.u32.totalorder %s2763_s5, %s2758_s4 }
 0x100   : > { %p2767_p0 = scmp.lt.u32.totalorder %s2758_s4, %s3275_s27 }
 0x101   : > { %s3289_s28 = scalar_lea.hbm %s3753_s1, %s2191_s10  ;;  %p2762_p11 = pneg %p2761_p3 }
 0x102   : > { %p2766_p13 = por %p2765_p6, %p2764_p12 }
 0x104   : > { %p2768_p7 = por %p2767_p0, %p2766_p13 }
 0x106   : > { %p2769_p5 = pnand %p2768_p7, %p2762_p11 }
 0x108   : > { %2772 = shalt.err (!%p2769_p5)
}
 0x109   : > { %s2773_s22 = scalar_lea.vmem %s3284_s30, 128  ;;  %s2936_s10 = smov [#allocation6]  }
 0x10a   : > { %p2774_p8 = scmp.ne.s32.totalorder %s3284_s30, %s2773_s22  ;;  %s2778_s23 = sshll.u32 %s2936_s10, 4  ;;  %s2779_s23 = int_to_ptr.vmem [resolvable:$false] %s2778_s23 }
 0x10b   : > { %s2780_s6 = scalar_lea.vmem %s2779_s23, 256  ;;  %p2781_p4 = scmp.lt.s32.totalorder %s3284_s30, %s2779_s23 }
 0x10c   : > { %p2776_p3 = pnand %p2774_p8, %p2760_p1  ;;  %p2782_p12 = scmp.lt.s32.totalorder %s2780_s6, %s2773_s22 }
 0x10e   : > { %p2777_p9 = pneg %p2776_p3  ;;  %p2783_p6 = por %p2782_p12, %p2781_p4 }
 0x110   : > { %p2784_p13 = pnand %p2783_p6, %p2777_p9 }
 0x112   : > { %2787 = shalt.err (!%p2784_p13)
}
 0x113   : > { %2403 = dma.hbm_to_vmem [thread:$0]  (!%p3280_p10), %s3275_s27, 128, %s3284_s30, %s417_s3  }
 0x114   : > { %s435_s4 = sand.u32 1, %s2924_s18   ;;  %s439_s5 = scalar_lea.vmem [#allocation9], %s3270_s25 }
 0x115   : > { %s447_s7 = sshll.u32 %s439_s5, 4  ;;  %s436_s24 = scalar_lea.sflag [#allocation10], %s435_s4  ;;  %s448_s7 = int_to_ptr.vmem [resolvable:$true] %s447_s7 }
 0x116   : > { %s2788_s29 = scalar_lea.hbm %s3289_s28, 128  ;;  %s2793_s10 = scalar_lea.hbm %s3753_s1, 256 }
 0x117   : > { %p2789_p4 = scmp.ne.s32.totalorder %s3289_s28, %s2788_s29  ;;  %p2794_p0 = scmp.lt.u32.totalorder %s3289_s28, %s3753_s1 }
 0x118   : > { %p2795_p7 = scmp.lt.u32.totalorder %s2793_s10, %s2788_s29  ;;  %p2797_p8 = scmp.lt.u32.totalorder %s2788_s29, %s3289_s28 }
 0x119   : > { %p2791_p9 = pnand %p2789_p4, %p2760_p1 }
 0x11a   : > { %p2796_p5 = por %p2795_p7, %p2794_p0 }
 0x11b   : > { %p2792_p11 = pneg %p2791_p9 }
 0x11c   : > { %p2798_p3 = por %p2797_p8, %p2796_p5 }
 0x11e   : > { %p2799_p12 = pnand %p2798_p3, %p2792_p11 }
 0x120   : > { %2802 = shalt.err (!%p2799_p12)
}
 0x121   : > { %s2803_s3 = scalar_lea.vmem %s448_s7, 128  ;;  %s2937_s25 = smov [#allocation9]  }
 0x122   : > { %p2804_p6 = scmp.ne.s32.totalorder %s448_s7, %s2803_s3  ;;  %s2808_s27 = sshll.u32 %s2937_s25, 4  ;;  %s2809_s27 = int_to_ptr.vmem [resolvable:$false] %s2808_s27 }
 0x123   : > { %s2810_s30 = scalar_lea.vmem %s2809_s27, 256  ;;  %p2811_p9 = scmp.lt.s32.totalorder %s448_s7, %s2809_s27 }
 0x124   : > { %p2806_p13 = pnand %p2804_p6, %p2760_p1  ;;  %p2812_p2 = scmp.lt.s32.totalorder %s2810_s30, %s2803_s3 }
 0x126   : > { %p2807_p4 = pneg %p2806_p13  ;;  %p2813_p0 = por %p2812_p2, %p2811_p9 }
 0x128   : > { %p2814_p7 = pnand %p2813_p0, %p2807_p4 }
 0x12a   : > { %2817 = shalt.err (!%p2814_p7)
}
 0x12b   : > { %2406 = dma.hbm_to_vmem [thread:$0]  (!%p3280_p10), %s3289_s28, 128, %s448_s7, %s436_s24  }
 0x12c   : > { %s3754_s4 = sld [smem:[#allocation33_spill]] }
 0x132   : > { %p3755_p11 = scmp.ne.s32.totalorder %s3754_s4, 0 }
 0x133   : > { %s3340_s5 = sand.u32 (!%p3755_p11), 1, %s2908_s14   ;;  %p3756_p2 = scmp.ne.s32.totalorder (!%p3755_p11), %s3749_s2, 0 }
 0x134   : > { %456 = sbr.rel (%p3755_p11) target bundleno = 2203 (0x89b), region = 60  ;;  %s3343_s29 = sshll.u32 (!%p3755_p11), %s3340_s5, 3 }
 0x135   : > { %s459_s16 = scalar_lea.sflag (!%p3755_p11), [#allocation7], %s3340_s5  ;;  %s462_s22 = scalar_lea.vmem (!%p3755_p11), [#allocation6], %s3343_s29 }
 0x13b   : > { %2871 = dma.done.wait (%p3756_p2), %s459_s16, 128  }
 0x13c   : > { %2873 = vsyncadd (%p3756_p2), %s459_s16, 4294967168  ;;  %s467_s21 = sand.u32 1, %s3038_s19   ;;  %s471_s7 = scalar_lea.vmem [#allocation9], %s3343_s29 }
 0x13d   : > { %s468_s28 = scalar_lea.sflag [#allocation10], %s467_s21 }
 0x13e   : > { %2875 = dma.done.wait (%p3756_p2), %s468_s28, 128  }
 0x13f   : > { %2877 = vsyncadd (%p3756_p2), %s468_s28, 4294967168  ;;  %p3757_p10 = scmp.eq.s32.totalorder %s3038_s19, 0 }
 0x141   : > { %2879 = dma.done.wait (%p3757_p10), [#allocation10], 256   ;;  %p3758_p1 = pmov %p3757_p10 }
 0x143   : > { %2881 = vsyncadd (%p3758_p1), [#allocation10], 4294967040  ;;  %p3759_p5 = pmov %p3758_p1 }
 0x144   : > { %p3760_p8 = pmov %p3758_p1 }
 0x145   : > { %2883 = dma.done.wait (%p3759_p5), [#allocation13], 272  }
 0x146   : > { %2885 = vsyncadd (%p3760_p8), [#allocation13], 4294967024  ;;  %p3761_p3 = pmov %p3758_p1 }
 0x147   : > { %p3762_p12 = pmov %p3758_p1 }
 0x148   : > { %2887 = dma.done.wait (%p3761_p3), [#allocation16], 272  }
 0x149   : > { %2889 = vsyncadd (%p3762_p12), [#allocation16], 4294967024  ;;  %p3763_p6 = pmov %p3758_p1 }
 0x14a   : > { %p3764_p13 = pmov %p3758_p1 }
 0x14b   : > { %2891 = dma.done.wait (%p3763_p6), [#allocation19], 32  }
 0x14c   : > { %2893 = vsyncadd (%p3764_p13), [#allocation19], 4294967264  ;;  %p3765_p4 = pmov %p3758_p1 }
 0x14d   : > { %p3766_p9 = pmov %p3758_p1 }
 0x14e   : > { %2895 = dma.done.wait (%p3765_p4), [#allocation22], 16  }
 0x14f   : > { %2897 = vsyncadd (%p3766_p9), [#allocation22], 4294967280  ;;  %v2938_v0 = vmov 0.0   ;;  %vm2939_vm0 = vmmov 0   ;;  %v2502_v1 = vld [vmem:[#allocation11] sm:$0xff]   ;;  %v2503_v2 = vld [vmem:[#allocation14] sm:$0xff]   ;;  %v635_v24 = vlaneseq }
 0x150   : > { %2265 = vmatprep.subr.bf16.mxu0 %v2938_v0  ;;  %2273 = vmatprep.subr.bf16.mxu1 %v2938_v0  ;;  %v2504_v3 = vld [vmem:[#allocation11 + $0x8] sm:$0xff]   ;;  %v2505_v4 = vld [vmem:[#allocation14 + $0x8] sm:$0xff]   ;;  %vm575_vm1 = vcmask 261120   ;;  %v2206_v9 = vld [vmem:[#allocation12] ss:$0 sm:$0xff]  ;;  %s2940_s19 = smov 120  }
 0x151   : > { %2269 = vmatprep.mubr.msk.bf16.mxu0 %vm2939_vm0, %v2938_v0  ;;  %2277 = vmatprep.mubr.msk.bf16.mxu1 %vm2939_vm0, %v2938_v0  ;;  %v3387_v5 = vld [vmem:[%s462_s22] sm:$0xff]  ;;  %v789_v6 = vld [vmem:[%s471_s7] sm:$0xff]  ;;  %s2941_s2 = smov 104   ;;  %s2942_s24 = smov 112   ;;  %vm784_vm2 = vcmask 64512   ;;  %v3415_v29 = vshrl.u32 %v635_v24, 7 }
 0x152   : > { %2266 = vmatpush3.bf16.msra.mxu0 %v2502_v1  ;;  %2274 = vmatpush3.bf16.msra.mxu1 %v2503_v2  ;;  %v551_v7 = vpack.c.bf16 %v3387_v5, %v3387_v5  ;;  %v790_v8 = vpack.c.bf16 %v789_v6, %v789_v6  ;;  %v2212_v10 = vld [vmem:[#allocation15] ss:$0 sm:$0xff]  ;;  %785 = vst.msk [vmem:[#allocation5] sm:$0xff] %vm784_vm2, %v2938_v0  ;;  %786 = vst.msk [vmem:[#allocation5 + $0x8] sm:$0xff] %vm784_vm2, %v2938_v0  ;;  %v2943_v22 = vmov 1983009808  }
 0x153   : > { %2267 = vmatprep.subr.bf16.mxu0 %v2938_v0  ;;  %2275 = vmatprep.subr.bf16.mxu1 %v2938_v0  ;;  %787 = vst.msk [vmem:[#allocation5 + $0x10] sm:$0xff] %vm784_vm2, %v2938_v0  ;;  %788 = vst.msk [vmem:[#allocation5 + $0x18] sm:$0xff] %vm784_vm2, %v2938_v0  ;;  %v633_v23 = vunpack.c.l.s4 %v2943_v22  ;;  %v2944_v25 = vmov 1934713408   ;;  %vm770_vm3 = vcmask 60416   ;;  %vm775_vm4 = vcmask 7168  }
 0x154   : > { %v665_v26 = vunpack.c.l.s4 %v2944_v25  ;;  %780 = vst.msk [vmem:[#allocation4] sm:$0xff] %vm775_vm4, %v2938_v0  ;;  %781 = vst.msk [vmem:[#allocation4 + $0x8] sm:$0xff] %vm775_vm4, %v2938_v0  ;;  %s2947_s10 = smov 96   ;;  %vm1494_vm6 = vcmask 1043456   ;;  %s2948_s23 = smov 16   ;;  %vm1876_vm7 = vcmask 130048  }
 0x155   : > { %v634_v28 = vunpack.c.0.s8 %v633_v23  ;;  %782 = vst.msk [vmem:[#allocation4 + $0x10] sm:$0xff] %vm775_vm4, %v2938_v0  ;;  %783 = vst.msk [vmem:[#allocation4 + $0x18] sm:$0xff] %vm775_vm4, %v2938_v0  ;;  %s2949_s6 = smov 8   ;;  %s2950_s3 = smov 24   ;;  %vm1878_vm8 = vcmask 195584  }
 0x156   : > { %2268 = vmatpush3.bf16.msra.mxu0 %v2504_v3  ;;  %2276 = vmatpush3.bf16.msra.mxu1 %v2505_v4  ;;  %v666_v31 = vunpack.c.0.s8 %v665_v26  ;;  %s3767_s25 = sld [smem:[#allocation32_spill]]  ;;  %s544_s30 = scalar_lea.vmem [#allocation23], %s3343_s29 }
 0x157   : > { %2281 = vmatprep.subr.bf16.mxu0 %v2938_v0  ;;  %2287 = vmatprep.subr.bf16.mxu1 %v2938_v0  ;;  %v3418_v32 = vsub.s32 %v634_v28, %v3415_v29  ;;  %s1995_s4 = sshll.u32 %s544_s30, 4  ;;  %s3768_s21 = sld [smem:[#allocation41_spill]]  ;;  %s3659_s4 = int_to_ptr.vmem [resolvable:$true] %s1995_s4 }
 0x158   : > { %v3421_v39 = vsub.s32 %v666_v31, %v3415_v29  ;;  %s1981_s7 = scalar_lea.sflag [#allocation8], %s3340_s5  ;;  %p3769_p7 = scmp.ne.s32.totalorder %s3750_s20, 0 }
 0x159   : > { %2270 = vmatmul.mubr.msk.bf16.vlgmr.msra.gmra.mrb[0].mxu0 %vm575_vm1, %v551_v7  ;;  %2278 = vmatmul.mubr.msk.bf16.vlgmr.msra.gmra.mrb[0].mxu1 %vm575_vm1, %v790_v8  ;;  %s2951_s29 = smov [#allocation23]  }
 0x15a   : > { %2283 = vmatprep.mubr.msk.bf16.mxu0 %vm2939_vm0, %v2938_v0  ;;  %2289 = vmatprep.mubr.msk.bf16.mxu1 %vm2939_vm0, %v2938_v0 }
 0x15c   : > { %s2237_s27 = sshll.u32 %s3767_s25, 7 }
 0x15d   : > { %s3657_s28 = scalar_lea.hbm %s3768_s21, %s2237_s27 }
 0x22c   : > { %v613_v11 = vpop.f32.mrb[0].mxu0  ;;  %v852_v13 = vpop.f32.mrb[0].mxu1 }
 0x22d   : > { %v614_v12 = vadd.f32 %v2206_v9, %v613_v11  ;;  %v2271_v14 = vpop.f32.mrb[1].mxu0  ;;  %v3399_v15 = vadd.f32 %v2212_v10, %v852_v13  ;;  %v2279_v16 = vpop.f32.mrb[1].mxu1 }
 0x22e   : > { %v616_v17 = vpop.f32.mrb[2].mxu0  ;;  %v855_v19 = vpop.f32.mrb[2].mxu1 }
 0x22f   : > { %v619_v18 = vmul.f32 0.35355338, %v614_v12  ;;  %v2272_v20 = vpop.f32.mrb[3].mxu0  ;;  %859 = vrot.lane.b32.xlu1 %v3399_v15, %s2940_s19  ;;  %v2280_v21 = vpop.f32.mrb[3].mxu1 }
 0x231   : > { %621 = vrot.lane.b32.xlu0 %v619_v18, %s2940_s19  ;;  %s2818_s19 = scalar_lea.vmem %s3659_s4, 128 }
 0x232   : > { %p2819_p0 = scmp.ne.s32.totalorder %s3659_s4, %s2818_s19 }
 0x233   : > { %627 = vrot.lane.b32.xlu1 %v619_v18, %s2941_s2 }
 0x234   : > { %p2820_p11 = pnand %p2819_p0, %p3769_p7 }
 0x235   : > { %624 = vrot.lane.b32.xlu0 %v619_v18, %s2942_s24 }
 0x236   : > { %p2821_p2 = pneg %p2820_p11 }
 0x237   : > { %865 = vrot.lane.b32.xlu1 %v3399_v15, %s2941_s2  ;;  %s2822_s2 = sshll.u32 %s2951_s29, 4  ;;  %s2823_s2 = int_to_ptr.vmem [resolvable:$false] %s2822_s2 }
 0x238   : > { %p2825_p10 = scmp.lt.s32.totalorder %s3659_s4, %s2823_s2 }
 0x239   : > { %862 = vrot.lane.b32.xlu0 %v3399_v15, %s2942_s24  ;;  %s2824_s24 = scalar_lea.vmem %s2823_s2, 256 }
 0x23a   : > { %p2826_p1 = scmp.lt.s32.totalorder %s2824_s24, %s2818_s19 }
 0x23c   : > { %p2827_p5 = por %p2826_p1, %p2825_p10 }
 0x23e   : > { %p2828_p8 = pnand %p2827_p5, %p2821_p2 }
 0x2a1   : > { %v3412_v27 = vpop.permute.xlu1 %859 }
 0x2a3   : > { %v622_v30 = vpop.permute.xlu0 %621 }
 0x2a5   : > { %v628_v33 = vpop.permute.xlu1 %627 }
 0x2a6   : > { %v646_v34 = vcombine.low %v622_v30, %v628_v33  ;;  %v647_v35 = vcombine.high %v622_v30, %v628_v33 }
 0x2a7   : > { %v625_v36 = vpop.permute.xlu0 %624 }
 0x2a8   : > { %v630_v37 = vcombine.low %v619_v18, %v625_v36  ;;  %v631_v38 = vcombine.high %v619_v18, %v625_v36  ;;  %v654_v40 = vrot.slane %v646_v34, %v3418_v32  ;;  %v661_v41 = vrot.slane %v647_v35, %v3418_v32 }
 0x2a9   : > { %v3427_v44 = vpop.permute.xlu1 %865 }
 0x2aa   : > { %v638_v42 = vrot.slane %v630_v37, %v3418_v32  ;;  %v645_v43 = vrot.slane %v631_v38, %v3418_v32  ;;  %v884_v45 = vcombine.low %v3412_v27, %v3427_v44  ;;  %v885_v46 = vcombine.high %v3412_v27, %v3427_v44 }
 0x2ab   : > { %v3433_v47 = vpop.permute.xlu0 %862 }
 0x2ac   : > { %v662_v48 = vcombine.low %v638_v42, %v654_v40  ;;  %v663_v49 = vcombine.high %v638_v42, %v654_v40  ;;  %v678_v50 = vcombine.low %v645_v43, %v661_v41  ;;  %v679_v51 = vcombine.high %v645_v43, %v661_v41 }
 0x2ad   : > { %v868_v52 = vcombine.low %v3399_v15, %v3433_v47  ;;  %v869_v53 = vcombine.high %v3399_v15, %v3433_v47  ;;  %v892_v58 = vrot.slane %v884_v45, %v3418_v32  ;;  %v899_v59 = vrot.slane %v885_v46, %v3418_v32 }
 0x2ae   : > { %v670_v54 = vrot.slane %v662_v48, %v3421_v39  ;;  %v677_v55 = vrot.slane %v663_v49, %v3421_v39  ;;  %v686_v56 = vrot.slane %v678_v50, %v3421_v39  ;;  %v693_v57 = vrot.slane %v679_v51, %v3421_v39 }
 0x2af   : > { %v876_v60 = vrot.slane %v868_v52, %v3418_v32  ;;  %v883_v61 = vrot.slane %v869_v53, %v3418_v32 }
 0x2b0   : > { %v698_v62 = vcombine.low %v670_v54, %v677_v55  ;;  %v2210_v63 = vcombine.high %v670_v54, %v677_v55  ;;  %v714_v1 = vcombine.low %v686_v56, %v693_v57  ;;  %v2211_v2 = vcombine.high %v686_v56, %v693_v57 }
 0x2b1   : > { %v900_v3 = vcombine.low %v876_v60, %v892_v58  ;;  %v901_v4 = vcombine.high %v876_v60, %v892_v58  ;;  %v916_v6 = vcombine.low %v883_v61, %v899_v59  ;;  %v917_v7 = vcombine.high %v883_v61, %v899_v59 }
 0x2b2   : > { %v705_v8 = vrot.slane %v698_v62, %v3418_v32  ;;  %v713_v9 = vrot.slane %v2210_v63, %v3418_v32  ;;  %v721_v10 = vrot.slane %v714_v1, %v3418_v32  ;;  %v729_v11 = vrot.slane %v2211_v2, %v3418_v32 }
 0x2b3   : > { %v908_v12 = vrot.slane %v900_v3, %v3421_v39  ;;  %v915_v13 = vrot.slane %v901_v4, %v3421_v39  ;;  %v924_v14 = vrot.slane %v916_v6, %v3421_v39  ;;  %v931_v16 = vrot.slane %v917_v7, %v3421_v39 }
 0x2b4   : > { %v730_v17 = vcombine.low %v705_v8, %v713_v9  ;;  %v731_v18 = vcombine.high %v705_v8, %v713_v9  ;;  %v746_v19 = vcombine.low %v721_v10, %v729_v11  ;;  %v747_v20 = vcombine.high %v721_v10, %v729_v11 }
 0x2b5   : > { %v936_v21 = vcombine.low %v908_v12, %v915_v13  ;;  %v2216_v22 = vcombine.high %v908_v12, %v915_v13  ;;  %v952_v23 = vcombine.low %v924_v14, %v931_v16  ;;  %v2217_v25 = vcombine.high %v924_v14, %v931_v16 }
 0x2b6   : > { %v738_v26 = vrot.slane %v730_v17, %v3421_v39  ;;  %v745_v28 = vrot.slane %v731_v18, %v3421_v39  ;;  %v754_v30 = vrot.slane %v746_v19, %v3421_v39  ;;  %v761_v31 = vrot.slane %v747_v20, %v3421_v39 }
 0x2b7   : > { %v943_v33 = vrot.slane %v936_v21, %v3418_v32  ;;  %v951_v34 = vrot.slane %v2216_v22, %v3418_v32  ;;  %v959_v35 = vrot.slane %v952_v23, %v3418_v32  ;;  %v967_v36 = vrot.slane %v2217_v25, %v3418_v32 }
 0x2b8   : > { %v762_v37 = vcombine.low %v738_v26, %v754_v30  ;;  %v763_v38 = vcombine.high %v738_v26, %v754_v30  ;;  %v764_v40 = vcombine.low %v745_v28, %v761_v31  ;;  %v765_v41 = vcombine.high %v745_v28, %v761_v31 }
 0x2b9   : > { %v968_v42 = vcombine.low %v943_v33, %v951_v34  ;;  %v984_v43 = vcombine.low %v959_v35, %v967_v36  ;;  %v969_v45 = vcombine.high %v943_v33, %v951_v34  ;;  %v985_v46 = vcombine.high %v959_v35, %v967_v36 }
 0x2ba   : > { %v766_v48 = vpack.c.bf16 %v762_v37, %v762_v37  ;;  %v767_v49 = vpack.c.bf16 %v763_v38, %v763_v38  ;;  %v768_v50 = vpack.c.bf16 %v764_v40, %v764_v40  ;;  %v769_v51 = vpack.c.bf16 %v765_v41, %v765_v41 }
 0x2bb   : > { %v976_v52 = vrot.slane %v968_v42, %v3421_v39  ;;  %v992_v53 = vrot.slane %v984_v43, %v3421_v39  ;;  %v983_v56 = vrot.slane %v969_v45, %v3421_v39  ;;  %v999_v57 = vrot.slane %v985_v46, %v3421_v39 }
 0x2bc   : > { %771 = vst.msk [vmem:[#allocation2] sm:$0xf] %vm770_vm3, %v766_v48  ;;  %772 = vst.msk [vmem:[#allocation2 + $0x4] sm:$0xf] %vm770_vm3, %v767_v49  ;;  %v2945_v10 = vmov -inf   ;;  %v1355_v11 = vand.u32 127, %v635_v24 }
 0x2bd   : > { %773 = vst.msk [vmem:[#allocation2 + $0x8] sm:$0xf] %vm770_vm3, %v768_v50  ;;  %774 = vst.msk [vmem:[#allocation2 + $0xc] sm:$0xf] %vm770_vm3, %v769_v51  ;;  %v1000_v54 = vcombine.low %v976_v52, %v992_v53  ;;  %v1001_v55 = vcombine.high %v976_v52, %v992_v53  ;;  %v1002_v62 = vcombine.low %v983_v56, %v999_v57  ;;  %v2946_v41 = vmov 0  }
 0x2be   : > { %v1003_v63 = vcombine.high %v983_v56, %v999_v57  ;;  %777 = vst.msk [vmem:[#allocation3 + $0x8] sm:$0xff] %vm775_vm4, %v2945_v10  ;;  %776 = vst.msk [vmem:[#allocation3] sm:$0xff] %vm775_vm4, %v2945_v10  ;;  %vm1359_vm5 = vcmp.gt.s32.totalorder %v1355_v11, %v3415_v29  ;;  %2501 = vset.pattern.permute.xlu1 %v2946_v41  ;;  %2500 = vset.pattern.permute.xlu0 %v2946_v41 }
 0x2bf   : > { %v1004_v58 = vpack.c.bf16 %v1000_v54, %v1000_v54  ;;  %v1005_v59 = vpack.c.bf16 %v1001_v55, %v1001_v55  ;;  %v1006_v1 = vpack.c.bf16 %v1002_v62, %v1002_v62  ;;  %778 = vst.msk [vmem:[#allocation3 + $0x10] sm:$0xff] %vm775_vm4, %v2945_v10  ;;  %779 = vst.msk [vmem:[#allocation3 + $0x18] sm:$0xff] %vm775_vm4, %v2945_v10 }
 0x2c0   : > { %v1007_v2 = vpack.c.bf16 %v1003_v63, %v1003_v63 }
 0x2c1   : > { %v1169_v60 = vsel %vm784_vm2, %v1004_v58, 0  ;;  %v1215_v61 = vsel %vm784_vm2, %v1005_v59, 0  ;;  %v1261_v6 = vsel %vm784_vm2, %v1006_v1, 0 }
 0x2c2   : > { %2282 = vmatpush3.bf16.xpose.msra.mxu0 %v1169_v60  ;;  %2288 = vmatpush3.bf16.xpose.msra.mxu1 %v1215_v61  ;;  %v1307_v7 = vsel %vm784_vm2, %v1007_v2, 0 }
 0x2c3   : > { %2293 = vmatprep.subr.bf16.mxu0 %v2938_v0  ;;  %2299 = vmatprep.subr.bf16.mxu1 %v2938_v0  ;;  %v1160_v3 = vld [vmem:[#allocation2] sm:$0xf]  ;;  %v1161_v4 = vld [vmem:[#allocation2 + $0x4] sm:$0xf] }
 0x2c4   : > { %v1162_v8 = vld [vmem:[#allocation2 + $0x8] sm:$0xf]  ;;  %v1163_v9 = vld [vmem:[#allocation2 + $0xc] sm:$0xf] }
 0x2c5   : > { %v3533_v29 = vld [vmem:[#allocation3 + $0x8] sm:$0xff]  ;;  %v3535_v42 = vld [vmem:[#allocation3] sm:$0xff] }
 0x2c6   : > { %v3558_v52 = vld [vmem:[#allocation3 + $0x18] sm:$0xff] }
 0x2c9   : > { %2284 = vmatmul.mubr.msk.bf16.vlgmr.msra.gmra.mrb[4].mxu0 %vm784_vm2, %v1160_v3  ;;  %2290 = vmatmul.mubr.msk.bf16.vlgmr.msra.gmra.mrb[4].mxu1 %vm784_vm2, %v1161_v4 }
 0x2ca   : > { %2294 = vmatpush3.bf16.xpose.msra.mxu0 %v1261_v6  ;;  %2300 = vmatpush3.bf16.xpose.msra.mxu1 %v1307_v7 }
 0x2cb   : > { %2295 = vmatprep.mubr.msk.bf16.mxu0 %vm2939_vm0, %v2938_v0  ;;  %2301 = vmatprep.mubr.msk.bf16.mxu1 %vm2939_vm0, %v2938_v0 }
 0x2cc   : > { %2305 = vmatprep.subr.bf16.mxu0 %v2938_v0  ;;  %2311 = vmatprep.subr.bf16.mxu1 %v2938_v0 }
 0x2d1   : > { %2296 = vmatmul.mubr.msk.bf16.vlgmr.msra.gmra.mrb[8].mxu0 %vm784_vm2, %v1162_v8  ;;  %2302 = vmatmul.mubr.msk.bf16.vlgmr.msra.gmra.mrb[8].mxu1 %vm784_vm2, %v1163_v9 }
 0x2d2   : > { %2307 = vmatprep.mubr.msk.bf16.mxu0 %vm2939_vm0, %v2938_v0  ;;  %2313 = vmatprep.mubr.msk.bf16.mxu1 %vm2939_vm0, %v2938_v0 }
 0x39c   : > { %v1205_v12 = vpop.f32.mrb[4].mxu0  ;;  %v1251_v13 = vpop.f32.mrb[4].mxu1 }
 0x39d   : > { %v3507_v14 = vsel %vm1359_vm5, -1e+09, %v1205_v12  ;;  %v3511_v16 = vsel %vm1359_vm5, -1e+09, %v1251_v13  ;;  %v2285_v17 = vpop.f32.mrb[5].mxu0  ;;  %v2291_v18 = vpop.f32.mrb[5].mxu1 }
 0x39e   : > { %v1208_v19 = vpop.f32.mrb[6].mxu0  ;;  %v1254_v20 = vpop.f32.mrb[6].mxu1  ;;  %v1373_v21 = vsel %vm784_vm2, %v3511_v16, -inf  ;;  %v1370_v24 = vsel %vm784_vm2, %v3507_v14, -inf }
 0x39f   : > { %1374 = vmax.xlane.f32.xlu1 %v1373_v21  ;;  %v2292_v22 = vpop.f32.mrb[7].mxu1  ;;  %1371 = vmax.xlane.f32.xlu0 %v1370_v24  ;;  %v2286_v23 = vpop.f32.mrb[7].mxu0 }
 0x3a4   : > { %v1297_v25 = vpop.f32.mrb[8].mxu0  ;;  %v1343_v26 = vpop.f32.mrb[8].mxu1 }
 0x3a5   : > { %v3519_v28 = vsel %vm1359_vm5, -1e+09, %v1297_v25  ;;  %v2297_v30 = vpop.f32.mrb[9].mxu0  ;;  %v2303_v31 = vpop.f32.mrb[9].mxu1  ;;  %v3525_v36 = vsel %vm1359_vm5, -1e+09, %v1343_v26 }
 0x3a6   : > { %v1300_v33 = vpop.f32.mrb[10].mxu0  ;;  %v1346_v34 = vpop.f32.mrb[10].mxu1  ;;  %v1376_v35 = vsel %vm784_vm2, %v3519_v28, -inf  ;;  %v1379_v40 = vsel %vm784_vm2, %v3525_v36, -inf }
 0x3a7   : > { %v2304_v37 = vpop.f32.mrb[11].mxu1  ;;  %1377 = vmax.xlane.f32.xlu0 %v1376_v35  ;;  %v2298_v38 = vpop.f32.mrb[11].mxu0 }
 0x3ab   : > { %1380 = vmax.xlane.f32.xlu0 %v1379_v40 }
 0x3b0   : > { %1008 = vrot.lane.b32.xlu1 %v3399_v15, %s2947_s10 }
 0x3b4   : > { %1012 = vrot.lane.b32.xlu1 %v3433_v47, %s2947_s10  ;;  %v3553_v47 = vld [vmem:[#allocation3 + $0x10] sm:$0xff] }
 0x3b8   : > { %1014 = vrot.lane.b32.xlu1 %v3427_v44, %s2947_s10 }
 0x3c1   : > { %1010 = vrot.lane.b32.xlu0 %v3412_v27, %s2947_s10 }
 0x42c   : > { %v1375_v43 = vpop.xlane.xlu1 %1374  ;;  %v1372_v45 = vpop.xlane.xlu0 %1371 }
 0x42d   : > { %v3538_v46 = vmax.f32 %v3533_v29, %v1375_v43  ;;  %v3541_v48 = vmax.f32 %v3535_v42, %v1372_v45 }
 0x42f   : > { %v1387_v15 = vsub.f32 %v3533_v29, %v3538_v46  ;;  %1685 = vst.msk [vmem:[#allocation3 + $0x8] sm:$0xff] %vm775_vm4, %v3538_v46  ;;  %v1386_v27 = vsub.f32 %v3535_v42, %v3541_v48  ;;  %1684 = vst.msk [vmem:[#allocation3] sm:$0xff] %vm775_vm4, %v3541_v48  ;;  %1405 = vperm.xlu1 %2501, %v3538_v46   ;;  %1400 = vperm.xlu0 %2500, %v3541_v48   ;;  %v1431_v42 = vld [vmem:[#allocation4 + $0x8] sm:$0xff]  ;;  %v1430_v48 = vld [vmem:[#allocation4] sm:$0xff] }
 0x430   : > { %v1009_v44 = vpop.permute.xlu1 %1008 }
 0x434   : > { %v1378_v49 = vpop.xlane.xlu0 %1377  ;;  %v1013_v51 = vpop.permute.xlu1 %1012 }
 0x435   : > { %v3556_v50 = vmax.f32 %v3553_v47, %v1378_v49  ;;  %v1020_v56 = vcombine.low %v1009_v44, %v1013_v51  ;;  %v1021_v57 = vcombine.high %v1009_v44, %v1013_v51 }
 0x437   : > { %v1388_v53 = vsub.f32 %v3553_v47, %v3556_v50  ;;  %1686 = vst.msk [vmem:[#allocation3 + $0x10] sm:$0xff] %vm775_vm4, %v3556_v50  ;;  %1410 = vperm.xlu1 %2501, %v3556_v50   ;;  %v1028_v63 = vrot.slane %v1020_v56, %v3418_v32  ;;  %v1035_v1 = vrot.slane %v1021_v57, %v3418_v32 }
 0x438   : > { %v1381_v54 = vpop.xlane.xlu0 %1380  ;;  %v1015_v59 = vpop.permute.xlu1 %1014 }
 0x439   : > { %v3566_v55 = vmax.f32 %v3558_v52, %v1381_v54 }
 0x43b   : > { %v1389_v58 = vsub.f32 %v3558_v52, %v3566_v55  ;;  %1687 = vst.msk [vmem:[#allocation3 + $0x18] sm:$0xff] %vm775_vm4, %v3566_v55  ;;  %1415 = vperm.xlu0 %2500, %v3566_v55   ;;  %v1432_v52 = vld [vmem:[#allocation4 + $0x10] sm:$0xff] }
 0x43c   : > { %v1011_v60 = vpop.permute.xlu0 %1010 }
 0x43d   : > { %v1036_v61 = vcombine.low %v1011_v60, %v1015_v59  ;;  %v1037_v62 = vcombine.high %v1011_v60, %v1015_v59 }
 0x43f   : > { %v1044_v2 = vrot.slane %v1036_v61, %v3418_v32  ;;  %v1051_v3 = vrot.slane %v1037_v62, %v3418_v32 }
 0x441   : > { %v1052_v4 = vcombine.low %v1028_v63, %v1044_v2  ;;  %v1053_v6 = vcombine.high %v1028_v63, %v1044_v2  ;;  %v1068_v7 = vcombine.low %v1035_v1, %v1051_v3  ;;  %v1069_v8 = vcombine.high %v1035_v1, %v1051_v3 }
 0x443   : > { %v1060_v9 = vrot.slane %v1052_v4, %v3421_v39  ;;  %v1067_v10 = vrot.slane %v1053_v6, %v3421_v39  ;;  %v1076_v11 = vrot.slane %v1068_v7, %v3421_v39  ;;  %v1083_v12 = vrot.slane %v1069_v8, %v3421_v39 }
 0x445   : > { %v1088_v13 = vcombine.low %v1060_v9, %v1067_v10  ;;  %v2218_v17 = vcombine.high %v1060_v9, %v1067_v10  ;;  %v1104_v18 = vcombine.low %v1076_v11, %v1083_v12  ;;  %v2219_v19 = vcombine.high %v1076_v11, %v1083_v12 }
 0x447   : > { %v1095_v20 = vrot.slane %v1088_v13, %v3418_v32  ;;  %v1103_v21 = vrot.slane %v2218_v17, %v3418_v32  ;;  %v1111_v24 = vrot.slane %v1104_v18, %v3418_v32  ;;  %v1119_v22 = vrot.slane %v2219_v19, %v3418_v32 }
 0x449   : > { %v1120_v23 = vcombine.low %v1095_v20, %v1103_v21  ;;  %v1136_v25 = vcombine.low %v1111_v24, %v1119_v22  ;;  %v1121_v26 = vcombine.high %v1095_v20, %v1103_v21  ;;  %v1137_v30 = vcombine.high %v1111_v24, %v1119_v22 }
 0x44a   : > { %v1392_v20 = vmul.f32 1.442695, %v1387_v15  ;;  %v1390_v21 = vmul.f32 1.442695, %v1386_v27  ;;  %v1394_v24 = vmul.f32 1.442695, %v1388_v53 }
 0x44b   : > { %v1128_v31 = vrot.slane %v1120_v23, %v3421_v39  ;;  %v1144_v33 = vrot.slane %v1136_v25, %v3421_v39  ;;  %v1135_v34 = vrot.slane %v1121_v26, %v3421_v39  ;;  %v1151_v35 = vrot.slane %v1137_v30, %v3421_v39  ;;  %v1433_v30 = vld [vmem:[#allocation4 + $0x18] sm:$0xff] }
 0x44c   : > { %v1396_v22 = vmul.f32 1.442695, %v1389_v58 }
 0x44d   : > { %v1152_v37 = vcombine.low %v1128_v31, %v1144_v33  ;;  %v1153_v38 = vcombine.high %v1128_v31, %v1144_v33  ;;  %v1154_v40 = vcombine.low %v1135_v34, %v1151_v35  ;;  %v1155_v41 = vcombine.high %v1135_v34, %v1151_v35 }
 0x44f   : > { %v1156_v43 = vpack.c.bf16 %v1152_v37, %v1152_v37  ;;  %v1157_v45 = vpack.c.bf16 %v1153_v38, %v1153_v38  ;;  %v1158_v44 = vpack.c.bf16 %v1154_v40, %v1154_v40  ;;  %v1159_v49 = vpack.c.bf16 %v1155_v41, %v1155_v41 }
 0x451   : > { %v1496_v51 = vsel %vm1494_vm6, %v1156_v43, 0  ;;  %v1542_v54 = vsel %vm1494_vm6, %v1157_v45, 0  ;;  %v1588_v56 = vsel %vm1494_vm6, %v1158_v44, 0  ;;  %v1634_v57 = vsel %vm1494_vm6, %v1159_v49, 0 }
 0x452   : > { %2306 = vmatpush3.bf16.msra.mxu0 %v1496_v51  ;;  %2312 = vmatpush3.bf16.msra.mxu1 %v1542_v54  ;;  %v1460_v51 = vld [vmem:[#allocation5 + $0x8] sm:$0xff] }
 0x453   : > { %2317 = vmatprep.subr.bf16.mxu0 %v2938_v0  ;;  %2323 = vmatprep.subr.bf16.mxu1 %v2938_v0 }
 0x4ae   : > { %v1406_v59 = vpop.permute.xlu1 %1405  ;;  %v1401_v60 = vpop.permute.xlu0 %1400 }
 0x4af   : > { %v1419_v61 = vsub.f32 %v3511_v16, %v1406_v59  ;;  %v1418_v62 = vsub.f32 %v3507_v14, %v1401_v60 }
 0x4b1   : > { %v1424_v63 = vmul.f32 1.442695, %v1419_v61  ;;  %v1422_v1 = vmul.f32 1.442695, %v1418_v62 }
 0x4b3   : > { %2508 = vpow2.f32 %v1424_v63 }
 0x4b4   : > { %2510 = vpow2.f32 %v1422_v1 }
 0x4b6   : > { %v1411_v2 = vpop.permute.xlu1 %1410 }
 0x4b7   : > { %v1420_v3 = vsub.f32 %v3519_v28, %v1411_v2 }
 0x4b9   : > { %v1426_v4 = vmul.f32 1.442695, %v1420_v3 }
 0x4ba   : > { %v1416_v6 = vpop.permute.xlu0 %1415 }
 0x4bb   : > { %2512 = vpow2.f32 %v1426_v4  ;;  %v1421_v7 = vsub.f32 %v3525_v36, %v1416_v6 }
 0x4bd   : > { %v2509_v8 = vpop.eup %2508  ;;  %v1428_v9 = vmul.f32 1.442695, %v1421_v7 }
 0x4be   : > { %v2511_v10 = vpop.eup %2510  ;;  %v1441_v11 = vsel %vm784_vm2, %v2509_v8, 0.0  ;;  %v1488_v16 = vpack.c.bf16 %v2509_v8, %v2509_v8 }
 0x4bf   : > { %2514 = vpow2.f32 %v1428_v9  ;;  %1442 = vadd.xlane.f32.xlu0 %v1441_v11  ;;  %v1438_v14 = vsel %vm784_vm2, %v2511_v10, 0.0  ;;  %v1487_v12 = vpack.c.bf16 %v2511_v10, %v2511_v10  ;;  %v1461_v9 = vld [vmem:[#allocation5 + $0x10] sm:$0xff] }
 0x4c0   : > { %1439 = vadd.xlane.f32.xlu1 %v1438_v14  ;;  %2314 = vmatmul.mubr.msk.bf16.vlgmr.msra.gmra.mrb[12].mxu1 %vm784_vm2, %v1488_v16  ;;  %2516 = vpow2.f32 %v1392_v20  ;;  %v1462_v16 = vld [vmem:[#allocation5 + $0x18] sm:$0xff] }
 0x4c1   : > { %2308 = vmatmul.mubr.msk.bf16.vlgmr.msra.gmra.mrb[12].mxu0 %vm784_vm2, %v1487_v12  ;;  %2324 = vmatpush3.bf16.msra.mxu1 %v1634_v57  ;;  %2518 = vpow2.f32 %v1390_v21 }
 0x4c2   : > { %2318 = vmatpush3.bf16.msra.mxu0 %v1588_v56  ;;  %2319 = vmatprep.mubr.msk.bf16.mxu0 %vm2939_vm0, %v2938_v0  ;;  %2520 = vpow2.f32 %v1394_v24  ;;  %v1459_v56 = vld [vmem:[#allocation5] sm:$0xff] }
 0x4c3   : > { %2325 = vmatprep.mubr.msk.bf16.mxu1 %vm2939_vm0, %v2938_v0  ;;  %2329 = vmatprep.subr.bf16.mxu0 %v2938_v0  ;;  %2522 = vpow2.f32 %v1396_v22 }
 0x4c5   : > { %v2513_v28 = vpop.eup %2512 }
 0x4c6   : > { %v1444_v36 = vsel %vm784_vm2, %v2513_v28, 0.0  ;;  %v1489_v13 = vpack.c.bf16 %v2513_v28, %v2513_v28 }
 0x4c7   : > { %1445 = vadd.xlane.f32.xlu0 %v1444_v36 }
 0x4c9   : > { %v2515_v17 = vpop.eup %2514  ;;  %2320 = vmatmul.mubr.msk.bf16.vlgmr.msra.gmra.mrb[16].mxu0 %vm784_vm2, %v1489_v13 }
 0x4ca   : > { %v1447_v18 = vsel %vm784_vm2, %v2515_v17, 0.0  ;;  %v1490_v19 = vpack.c.bf16 %v2515_v17, %v2515_v17  ;;  %2333 = vmatprep.mubr.msk.bf16.mxu0 %vm2939_vm0, %v2938_v0  ;;  %v2517_v23 = vpop.eup %2516 }
 0x4cb   : > { %1448 = vadd.xlane.f32.xlu1 %v1447_v18  ;;  %v2519_v25 = vpop.eup %2518  ;;  %v1435_v15 = vmul.f32 %v2517_v23, %v1431_v42 }
 0x4cc   : > { %2326 = vmatmul.mubr.msk.bf16.vlgmr.msra.gmra.mrb[16].mxu1 %vm784_vm2, %v1490_v19  ;;  %v2521_v29 = vpop.eup %2520  ;;  %v1434_v27 = vmul.f32 %v2519_v25, %v1430_v48 }
 0x4cd   : > { %v2523_v46 = vpop.eup %2522  ;;  %v1436_v55 = vmul.f32 %v2521_v29, %v1432_v52 }
 0x4ce   : > { %v1437_v34 = vmul.f32 %v2523_v46, %v1433_v30 }
 0x4dc   : > { %1470 = vperm.xlu1 %2501, %v2517_v23  }
 0x4dd   : > { %1465 = vperm.xlu0 %2500, %v2519_v25  }
 0x4e0   : > { %1475 = vperm.xlu1 %2501, %v2521_v29  }
 0x4e1   : > { %1480 = vperm.xlu0 %2500, %v2523_v46  }
 0x54c   : > { %v1443_v47 = vpop.xlane.xlu0 %1442 }
 0x54d   : > { %v1440_v50 = vpop.xlane.xlu1 %1439  ;;  %v1451_v53 = vadd.f32 %v1443_v47, %v1435_v15 }
 0x54e   : > { %v1450_v26 = vadd.f32 %v1440_v50, %v1434_v27 }
 0x54f   : > { %1456 = vst.msk [vmem:[#allocation4 + $0x8] sm:$0xff] %vm775_vm4, %v1451_v53 }
 0x550   : > { %1455 = vst.msk [vmem:[#allocation4] sm:$0xff] %vm775_vm4, %v1450_v26 }
 0x554   : > { %v1446_v58 = vpop.xlane.xlu0 %1445 }
 0x555   : > { %v1452_v31 = vadd.f32 %v1446_v58, %v1436_v55 }
 0x556   : > { %v1696_v33 = vld [vmem:[#allocation4 + $0x8] sm:$0xff] }
 0x557   : > { %1457 = vst.msk [vmem:[#allocation4 + $0x10] sm:$0xff] %vm775_vm4, %v1452_v31  ;;  %v1695_v35 = vld [vmem:[#allocation4] sm:$0xff]  ;;  %2524 = vrcp.f32 %v1696_v33 }
 0x558   : > { %v1449_v37 = vpop.xlane.xlu1 %1448  ;;  %2526 = vrcp.f32 %v1695_v35 }
 0x559   : > { %v1453_v38 = vadd.f32 %v1449_v37, %v1437_v34 }
 0x55b   : > { %1458 = vst.msk [vmem:[#allocation4 + $0x18] sm:$0xff] %vm775_vm4, %v1453_v38 }
 0x55c   : > { %v1471_v54 = vpop.permute.xlu1 %1470  ;;  %v1466_v57 = vpop.permute.xlu0 %1465 }
 0x55d   : > { %v1484_v59 = vmul.f32 %v1471_v54, %v1460_v51  ;;  %v1483_v60 = vmul.f32 %v1466_v57, %v1459_v56 }
 0x55e   : > { %v1697_v40 = vld [vmem:[#allocation4 + $0x10] sm:$0xff] }
 0x55f   : > { %2528 = vrcp.f32 %v1697_v40 }
 0x560   : > { %v1476_v10 = vpop.permute.xlu1 %1475  ;;  %v1481_v14 = vpop.permute.xlu0 %1480 }
 0x561   : > { %v2525_v41 = vpop.eup %2524  ;;  %v1485_v11 = vmul.f32 %v1476_v10, %v1461_v9  ;;  %v1486_v13 = vmul.f32 %v1481_v14, %v1462_v16 }
 0x562   : > { %v2527_v43 = vpop.eup %2526  ;;  %1710 = vperm.xlu0 %2500, %v2525_v41   ;;  %v1698_v45 = vld [vmem:[#allocation4 + $0x18] sm:$0xff] }
 0x563   : > { %1705 = vperm.xlu1 %2501, %v2527_v43   ;;  %2530 = vrcp.f32 %v1698_v45  ;;  %v2506_v43 = vld [vmem:[#allocation17] sm:$0xff]  }
 0x564   : > { %2330 = vmatpush3.bf16.msra.mxu0 %v2506_v43 }
 0x565   : > { %2331 = vmatprep.subr.bf16.mxu0 %v2938_v0 }
 0x569   : > { %v2529_v44 = vpop.eup %2528 }
 0x56a   : > { %1715 = vperm.xlu1 %2501, %v2529_v44  }
 0x56d   : > { %v2531_v49 = vpop.eup %2530 }
 0x56e   : > { %1720 = vperm.xlu0 %2500, %v2531_v49  }
 0x593   : > { %v1578_v61 = vpop.f32.mrb[12].mxu1 }
 0x594   : > { %v1532_v62 = vpop.f32.mrb[12].mxu0  ;;  %v1677_v63 = vadd.f32 %v1578_v61, %v1484_v59  ;;  %v2315_v1 = vpop.f32.mrb[13].mxu1 }
 0x595   : > { %v1676_v2 = vadd.f32 %v1532_v62, %v1483_v60  ;;  %v2309_v3 = vpop.f32.mrb[13].mxu0  ;;  %v1581_v4 = vpop.f32.mrb[14].mxu1  ;;  %v2507_v60 = vld [vmem:[#allocation17 + $0x8] sm:$0xff]  }
 0x596   : > { %1681 = vst.msk [vmem:[#allocation5 + $0x8] sm:$0xff] %vm784_vm2, %v1677_v63  ;;  %v1535_v6 = vpop.f32.mrb[14].mxu0  ;;  %v2316_v7 = vpop.f32.mrb[15].mxu1  ;;  %2332 = vmatpush3.bf16.msra.mxu0 %v2507_v60 }
 0x597   : > { %1680 = vst.msk [vmem:[#allocation5] sm:$0xff] %vm784_vm2, %v1676_v2  ;;  %v2310_v8 = vpop.f32.mrb[15].mxu0 }
 0x59c   : > { %v1624_v12 = vpop.f32.mrb[16].mxu0 }
 0x59d   : > { %v1678_v28 = vadd.f32 %v1624_v12, %v1485_v11  ;;  %v2321_v36 = vpop.f32.mrb[17].mxu0  ;;  %v1692_v27 = vld [vmem:[#allocation5 + $0x8] sm:$0xff] }
 0x59e   : > { %v1627_v17 = vpop.f32.mrb[18].mxu0  ;;  %v1691_v48 = vld [vmem:[#allocation5] sm:$0xff] }
 0x59f   : > { %1682 = vst.msk [vmem:[#allocation5 + $0x10] sm:$0xff] %vm784_vm2, %v1678_v28  ;;  %v2322_v18 = vpop.f32.mrb[19].mxu0  ;;  %v1670_v19 = vpop.f32.mrb[16].mxu1 }
 0x5a0   : > { %v1679_v20 = vadd.f32 %v1670_v19, %v1486_v13  ;;  %v2327_v21 = vpop.f32.mrb[17].mxu1  ;;  %v2230_v18 = vld [vmem:[#allocation18] ss:$0 sm:$0xff] }
 0x5a1   : > { %v1673_v24 = vpop.f32.mrb[18].mxu1 }
 0x5a2   : > { %1683 = vst.msk [vmem:[#allocation5 + $0x18] sm:$0xff] %vm784_vm2, %v1679_v20  ;;  %v2328_v22 = vpop.f32.mrb[19].mxu1 }
 0x5a6   : > { %v1693_v46 = vld [vmem:[#allocation5 + $0x10] sm:$0xff] }
 0x5a9   : > { %v1694_v47 = vld [vmem:[#allocation5 + $0x18] sm:$0xff] }
 0x5e1   : > { %v1711_v25 = vpop.permute.xlu0 %1710 }
 0x5e2   : > { %v1706_v23 = vpop.permute.xlu1 %1705  ;;  %v1724_v53 = vmul.f32 %v1711_v25, %v1692_v27 }
 0x5e3   : > { %v1723_v15 = vmul.f32 %v1706_v23, %v1691_v48 }
 0x5e9   : > { %v1716_v29 = vpop.permute.xlu1 %1715 }
 0x5ea   : > { %v1725_v42 = vmul.f32 %v1716_v29, %v1693_v46 }
 0x5ec   : > { %v1727_v26 = vcombine.low %v1723_v15, %v1725_v42  ;;  %v1728_v52 = vcombine.high %v1723_v15, %v1725_v42 }
 0x5ed   : > { %v1721_v50 = vpop.permute.xlu0 %1720 }
 0x5ee   : > { %v1726_v55 = vmul.f32 %v1721_v50, %v1694_v47  ;;  %v1735_v31 = vrot.slane %v1727_v26, %v3418_v32  ;;  %v1742_v33 = vrot.slane %v1728_v52, %v3418_v32  ;;  %v2235_v52 = vld [vmem:[#allocation21] ss:$0 sm:$0xff] }
 0x5f0   : > { %v1743_v58 = vcombine.low %v1724_v53, %v1726_v55  ;;  %v1744_v30 = vcombine.high %v1724_v53, %v1726_v55 }
 0x5f2   : > { %v1751_v34 = vrot.slane %v1743_v58, %v3418_v32  ;;  %v1758_v35 = vrot.slane %v1744_v30, %v3418_v32 }
 0x5f4   : > { %v1759_v37 = vcombine.low %v1735_v31, %v1751_v34  ;;  %v1760_v38 = vcombine.high %v1735_v31, %v1751_v34  ;;  %v1775_v40 = vcombine.low %v1742_v33, %v1758_v35  ;;  %v1776_v41 = vcombine.high %v1742_v33, %v1758_v35 }
 0x5f6   : > { %v1767_v45 = vrot.slane %v1759_v37, %v3421_v39  ;;  %v1774_v44 = vrot.slane %v1760_v38, %v3421_v39  ;;  %v1783_v49 = vrot.slane %v1775_v40, %v3421_v39  ;;  %v1790_v51 = vrot.slane %v1776_v41, %v3421_v39 }
 0x5f8   : > { %v1795_v54 = vcombine.low %v1767_v45, %v1774_v44  ;;  %v2228_v56 = vcombine.high %v1767_v45, %v1774_v44  ;;  %v1811_v57 = vcombine.low %v1783_v49, %v1790_v51  ;;  %v2229_v59 = vcombine.high %v1783_v49, %v1790_v51 }
 0x5fa   : > { %v1802_v61 = vrot.slane %v1795_v54, %v3418_v32  ;;  %v1810_v62 = vrot.slane %v2228_v56, %v3418_v32  ;;  %v1818_v63 = vrot.slane %v1811_v57, %v3418_v32  ;;  %v1826_v1 = vrot.slane %v2229_v59, %v3418_v32 }
 0x5fc   : > { %v1828_v2 = vcombine.high %v1802_v61, %v1810_v62  ;;  %v1844_v3 = vcombine.high %v1818_v63, %v1826_v1  ;;  %v1827_v4 = vcombine.low %v1802_v61, %v1810_v62  ;;  %v1843_v6 = vcombine.low %v1818_v63, %v1826_v1 }
 0x5fe   : > { %v1842_v7 = vrot.slane %v1828_v2, %v3421_v39  ;;  %v1858_v8 = vrot.slane %v1844_v3, %v3421_v39  ;;  %v1835_v0 = vrot.slane %v1827_v4, %v3421_v39  ;;  %v1851_v9 = vrot.slane %v1843_v6, %v3421_v39 }
 0x600   : > { %v1861_v10 = vcombine.low %v1842_v7, %v1858_v8  ;;  %v1860_v11 = vcombine.high %v1835_v0, %v1851_v9  ;;  %v1859_v16 = vcombine.low %v1835_v0, %v1851_v9  ;;  %v1862_v32 = vcombine.high %v1842_v7, %v1858_v8 }
 0x602   : > { %1868 = vrot.lane.b32.xlu0 %v1861_v10, %s2948_s23  ;;  %1864 = vrot.lane.b32.xlu1 %v1860_v11, %s2949_s6 }
 0x606   : > { %1872 = vrot.lane.b32.xlu1 %v1862_v32, %s2950_s3 }
 0x674   : > { %v1865_v14 = vpop.permute.xlu1 %1864  ;;  %v1869_v12 = vpop.permute.xlu0 %1868 }
 0x675   : > { %v1875_v28 = vsel %vm784_vm2, %v1859_v16, %v1865_v14 }
 0x676   : > { %v1877_v13 = vsel %vm1876_vm7, %v1875_v28, %v1869_v12 }
 0x678   : > { %v1873_v36 = vpop.permute.xlu1 %1872 }
 0x679   : > { %v1879_v17 = vsel %vm1878_vm8, %v1877_v13, %v1873_v36 }
 0x67a   : > { %v1880_v39 = vpack.c.bf16 %v1879_v17, %v1879_v17 }
 0x67c   : > { %2334 = vmatmul.mubr.msk.bf16.vlgmr.msra.gmra.mrb[20].mxu0 %vm575_vm1, %v1880_v39 }
 0x74f   : > { %v1941_v19 = vpop.f32.mrb[20].mxu0 }
 0x750   : > { %v1942_v20 = vadd.f32 %v2230_v18, %v1941_v19  ;;  %v2335_v21 = vpop.f32.mrb[21].mxu0 }
 0x751   : > { %v1944_v24 = vpop.f32.mrb[22].mxu0 }
 0x752   : > { %v2336_v22 = vpop.f32.mrb[23].mxu0  ;;  %v1948_v23 = vadd.f32 %v1942_v20, %v3387_v5  ;;  %v2234_v5 = vld [vmem:[#allocation20] ss:$0 sm:$0xff] }
 0x754   : > { %v1949_v25 = vsel %vm575_vm1, %v1948_v23, 0.0 }
 0x755   : > { %1950 = vadd.xlane.f32.xlu0 %v1949_v25 }
 0x7e2   : > { %v1951_v29 = vpop.xlane.xlu0 %1950 }
 0x7e3   : > { %v1953_v46 = vmul.f32 0.03125, %v1951_v29 }
 0x7e5   : > { %v1954_v42 = vsub.f32 %v1948_v23, %v1953_v46 }
 0x7e7   : > { %v1955_v48 = vmul.f32 %v1954_v42, %v1954_v42 }
 0x7e9   : > { %v1956_v15 = vsel %vm575_vm1, %v1955_v48, 0.0 }
 0x7ea   : > { %1957 = vadd.xlane.f32.xlu1 %v1956_v15 }
 0x877   : > { %v1958_v27 = vpop.xlane.xlu1 %1957 }
 0x878   : > { %v1959_v47 = vmul.f32 0.03125, %v1958_v27 }
 0x87a   : > { %v1960_v50 = vadd.f32 1e-05, %v1959_v47 }
 0x87c   : > { %2532 = vrsqrt.f32 %v1960_v50 }
 0x886   : > { %v2533_v53 = vpop.eup %2532 }
 0x887   : > { %v1962_v26 = vmul.f32 %v2533_v53, %v1954_v42 }
 0x889   : > { %v1970_v55 = vmul.f32 %v2234_v5, %v1962_v26 }
 0x88b   : > { %v1978_v58 = vadd.f32 %v2235_v52, %v1970_v55 }
 0x88d   : > { %1979 = vst.msk [vmem:[%s544_s30] sm:$0xff] %vm575_vm1, %v1978_v58 }
 0x88e   : > { %2831 = shalt.err (!%p2828_p8)
}
 0x88f   : > { %s2832_s5 = scalar_lea.hbm %s3657_s28, 128  ;;  %s2836_s6 = scalar_lea.hbm %s3768_s21, 256 }
 0x890   : > { %p2833_p3 = scmp.ne.s32.totalorder %s3657_s28, %s2832_s5  ;;  %p2837_p13 = scmp.lt.u32.totalorder %s3657_s28, %s3768_s21 }
 0x891   : > { %p2838_p4 = scmp.lt.u32.totalorder %s2836_s6, %s2832_s5  ;;  %p2840_p0 = scmp.lt.u32.totalorder %s2832_s5, %s3657_s28 }
 0x892   : > { %p2834_p12 = pnand %p2833_p3, %p3769_p7 }
 0x893   : > { %p2839_p9 = por %p2838_p4, %p2837_p13 }
 0x894   : > { %p2835_p6 = pneg %p2834_p12 }
 0x895   : > { %p2841_p11 = por %p2840_p0, %p2839_p9 }
 0x897   : > { %p2842_p2 = pnand %p2841_p11, %p2835_p6 }
 0x899   : > { %2845 = shalt.err (!%p2842_p2)
}
 0x89a   : > { %2373 = dma.vmem_to_hbm [thread:$0]  (%p3769_p7), %s3659_s4, 128, %s3657_s28, %s1981_s7  }
 0x89b PF: > { %s2007_s27 = sand.u32 1, %s2904_s13   ;;  %p3770_p10 = scmp.ne.s32.totalorder %s3751_s26, 0 }
 0x89c   : > { %p3771_p1 = scmp.ge.s32.totalorder %s2924_s18, 2  ;;  %s2008_s30 = scalar_lea.sflag [#allocation8], %s2007_s27 }
 0x89e   : > { %p2408_p5 = pnand %p3771_p1, %p3770_p10 }
 0x8a0   : > { %2899 = dma.done.wait (!%p2408_p5), %s2008_s30, 128  }
 0x8a1   : > { %2901 = vsyncadd (!%p2408_p5), %s2008_s30, 4294967168  ;;  %s33_s18 = sadd.s32 1, %s2924_s18   ;;  %s3772_s13 = smov %s2908_s14 }
 0x8a2   : > { %p30_p8 = scmp.ge.s32.totalorder %s33_s18, 4   ;;  %s3773_s14 = smov %s2912_s15 }
 0x8a3   : > { %s3774_s15 = smov %s3261_s12  ;;  %s3775_s16 = smov %s2920_s17 }
 0x8a4   : > { %s3776_s17 = smov %s3778_s11  ;;  %32 = sbr.rel (!%p30_p8) target bundleno = 21 (0x15), region = 158 }
 0x8ab   :  { %2013 = vsyncpa [#allocation7], 1 }
 0x8ac   :  { %2015 = vsyncpa [#allocation7 + $0x1], 1 }
 0x8ad   :  { %2016 = vsyncpa [#allocation10], 1 }
 0x8ae   :  { %2018 = vsyncpa [#allocation10 + $0x1], 1 }
 0x8af   :  { %2019 = vsyncpa [#allocation13], 1 }
 0x8b0   :  { %2020 = vsyncpa [#allocation16], 1 }
 0x8b1   :  { %2021 = vsyncpa [#allocation19], 1 }
 0x8b2   :  { %2022 = vsyncpa [#allocation22], 1 }
 0x8b3   :  { %2023 = vsyncpa [#allocation8], 1 }
 0x8b4   :  { %2025 = vsyncpa [#allocation8 + $0x1], 1 }

</bundles_post_ra>
